<compile_context>
chip_gen: v5e
topology: v5e:2x2
jax: 0.10.0
libtpu: 0.0.40
codegen_flags: <defaults>
</compile_context>

<pallas_src>
import math
import functools

import jax
import jax.numpy as jnp
from jax.experimental import pallas as pl
from jax.experimental.pallas import tpu as pltpu


# ---------------------------------------------------------------------------
# In-kernel helpers (pure jnp, traced inside the Pallas body)
# ---------------------------------------------------------------------------

def _erf(x):
    # Abramowitz & Stegun 7.1.26 rational approximation (|err| < 1.5e-7).
    a1, a2, a3, a4, a5 = 0.254829592, -0.284496736, 1.421413741, -1.453152027, 1.061405429
    p = 0.3275911
    sgn = jnp.where(x >= 0.0, 1.0, -1.0)
    ax = jnp.abs(x)
    t = 1.0 / (1.0 + p * ax)
    poly = ((((a5 * t + a4) * t + a3) * t + a2) * t + a1) * t
    return sgn * (1.0 - poly * jnp.exp(-ax * ax))


def _gelu_exact(x):
    # TODO(synk): if VALU becomes the binding slot at large shapes, switch to a
    # tanh-based GELU (single EUP op) -- kept exact-erf here for reference parity.
    return 0.5 * x * (1.0 + _erf(x * (1.0 / math.sqrt(2.0))))


def _layer_norm(x, gamma, beta, eps=1e-12):
    # Single-pass: one sweep computes sum and sum-of-squares.
    inv_n = 1.0 / x.shape[-1]
    mu = jnp.sum(x, axis=-1, keepdims=True) * inv_n
    ex2 = jnp.sum(x * x, axis=-1, keepdims=True) * inv_n
    var = jnp.maximum(ex2 - mu * mu, 0.0)
    return (x - mu) * jax.lax.rsqrt(var + eps) * gamma + beta


def _cast(t, mm_dtype):
    return t if mm_dtype is None else t.astype(mm_dtype)


# ---------------------------------------------------------------------------
# Fused kernel: whole encoder stack, grid = (batch_blocks, layers)
# ---------------------------------------------------------------------------

def _encoder_stack_kernel(x_ref,
                          wq_ref, bq_ref, wk_ref, bk_ref, wv_ref, bv_ref,
                          wo_ref, bo_ref, g1_ref, be1_ref,
                          w1_ref, b1_ref, w2_ref, b2_ref, g2_ref, be2_ref,
                          o_ref, o_scr,
                          *, batch, seq, heads, dim_head, mm_dtype):
    l = pl.program_id(1)

    # Layer 0 (per batch block): seed the carried (output-resident) activation.
    @pl.when(l == 0)
    def _():
        o_ref[...] = x_ref[...].astype(jnp.float32)

    xb = o_ref[...]                       # (rows, D) carried in VMEM across layers
    rows = xb.shape[0]
    xm = _cast(xb, mm_dtype)

    # ---------------- multi-head attention ----------------
    # Fused, lane-dense Q/K/V projections (scale folded into Wq/bq in wrapper).
    q = jnp.dot(xm, wq_ref[0], preferred_element_type=jnp.float32) + bq_ref[0]
    k = jnp.dot(xm, wk_ref[0], preferred_element_type=jnp.float32) + bk_ref[0]
    v = jnp.dot(xm, wv_ref[0], preferred_element_type=jnp.float32) + bv_ref[0]

    # Per-head scores / softmax / PV; per-head context written into a
    # lane-aligned slice of the (rows, inner) VMEM scratch so the output
    # projection is a single full-depth matmul.
    # TODO(synk): for realistic seq lengths on v7x, replace the full (b,n,n)
    # score tensor with flash-style KV tiling (online softmax).
    for h in range(heads):                # static unroll: heads is small
        sl = slice(h * dim_head, (h + 1) * dim_head)
        qh = _cast(q[:, sl], mm_dtype).reshape(batch, seq, dim_head)
        kh = _cast(k[:, sl], mm_dtype).reshape(batch, seq, dim_head)
        vh = _cast(v[:, sl], mm_dtype).reshape(batch, seq, dim_head)

        # batched scores, no transpose: contract last dims, batch = leading dim
        s = jnp.einsum("bnd,bmd->bnm", qh, kh, preferred_element_type=jnp.float32)
        s = s - jnp.max(s, axis=-1, keepdims=True)
        p = jnp.exp(s)
        p = p * pl.reciprocal(jnp.sum(p, axis=-1, keepdims=True), approx=True)

        oh = jnp.einsum("bnm,bmd->bnd", _cast(p, mm_dtype), vh,
                        preferred_element_type=jnp.float32)
        o_scr[:, sl] = oh.reshape(rows, dim_head).astype(o_scr.dtype)

    # Single wide output projection: (rows, inner) @ (inner, D).
    ctx = jnp.dot(o_scr[...], wo_ref[0], preferred_element_type=jnp.float32) + bo_ref[0]
    y1 = _layer_norm(ctx + xb, g1_ref[0], be1_ref[0])

    # ---------------- GELU MLP ----------------
    h1 = jnp.dot(_cast(y1, mm_dtype), w1_ref[0],
                 preferred_element_type=jnp.float32) + b1_ref[0]
    h1 = _gelu_exact(h1)
    h2 = jnp.dot(_cast(h1, mm_dtype), w2_ref[0],
                 preferred_element_type=jnp.float32) + b2_ref[0]
    o_ref[...] = _layer_norm(h2 + y1, g2_ref[0], be2_ref[0])


# ---------------------------------------------------------------------------
# Wrapper: stack per-layer weights, build specs, call the kernel
# ---------------------------------------------------------------------------

def self_attention_forward(x, params, *, mm_dtype=None, batch_blocks=None):
    """Runs the full stack of `self_att_lay` layers in one fused pallas_call.

    mm_dtype=None          -> all-f32 matmuls (matches the PyTorch reference).
    mm_dtype=jnp.bfloat16  -> bf16 matmul operands, f32 accumulation
                              (recommended on v6e / v7x: ~2x MXU, half weight DMA).
    batch_blocks           -> leading "parallel" grid axis over batch blocks
                              (defaults to 2 when divisible: feeds both v7x TCs).
    """
    B, N, D = x.shape
    L = len(params)
    heads = int(params[0]["heads"])
    inner = params[0]["wq"].shape[1]
    assert inner % heads == 0
    dim_head = inner // heads
    hidden = params[0]["w1"].shape[1]
    scale = 1.0 / math.sqrt(dim_head)
    wdt = jnp.float32 if mm_dtype is None else mm_dtype

    # Batch split for the parallel grid axis (row blocks must stay 8-aligned
    # unless the block equals the full row extent).
    nb = batch_blocks
    if nb is None:
        nb = 2 if (B % 2 == 0 and ((B // 2) * N) % 8 == 0) else 1
    if B % nb != 0 or (nb > 1 and ((B // nb) * N) % 8 != 0):
        nb = 1
    bpb = B // nb
    rows_pb = bpb * N

    def stack(name):
        return jnp.stack([p[name] for p in params], axis=0)

    # Wide weight slabs (one per layer); attention scale folded into Wq / bq.
    wq = (stack("wq") * scale).astype(wdt)   # (L, D, inner)
    wk = stack("wk").astype(wdt)
    wv = stack("wv").astype(wdt)
    bq = stack("bq") * scale                 # (L, 1, inner)
    bk = stack("bk")
    bv = stack("bv")
    wo = stack("wo").astype(wdt)             # (L, inner, D)
    bo = stack("bo")
    g1, be1 = stack("g1"), stack("be1")
    w1 = stack("w1").astype(wdt)             # (L, D, hidden)
    b1 = stack("b1")
    w2 = stack("w2").astype(wdt)             # (L, hidden, D)
    b2 = stack("b2")
    g2, be2 = stack("g2"), stack("be2")

    weights = (wq, bq, wk, bk, wv, bv, wo, bo, g1, be1, w1, b1, w2, b2, g2, be2)

    def wspec(arr):
        # All weight slabs are rank 3: (L, a, b); one layer's slab per grid step.
        # TODO(synk): at large D on v7x, use pipeline_mode=pl.Buffered(1) or
        # split attention/MLP into separate grid steps to halve resident weights.
        return pl.BlockSpec((1,) + tuple(arr.shape[1:]), lambda bi, l: (l, 0, 0))

    act_spec = pl.BlockSpec((rows_pb, D), lambda bi, l: (bi, 0))

    kernel = functools.partial(_encoder_stack_kernel, batch=bpb, seq=N,
                               heads=heads, dim_head=dim_head, mm_dtype=mm_dtype)

    # VMEM budget: double-buffered per-layer weights + resident activation/x
    # blocks + q/k/v/h1/score intermediates + scratch, with headroom.
    wbytes_per_layer = sum(int(a.size // L) * a.dtype.itemsize for a in weights)
    sdt = jnp.dtype(wdt).itemsize
    vmem_est = (2 * wbytes_per_layer
                + 4 * rows_pb * D * 4            # carry + x (double-buffered)
                + 4 * rows_pb * inner * 4        # q, k, v + slack
                + 2 * rows_pb * hidden * 4       # MLP hidden
                + 2 * bpb * N * N * 4            # per-head scores / probs
                + rows_pb * inner * sdt          # scratch
                + (8 << 20))
    vmem_limit = int(min(max(vmem_est, 32 << 20), 64 << 20))

    out2 = pl.pallas_call(
        kernel,
        out_shape=jax.ShapeDtypeStruct((B * N, D), jnp.float32),
        grid=(nb, L),
        in_specs=[act_spec] + [wspec(a) for a in weights],
        out_specs=act_spec,                      # constant index over layers -> resident carry
        scratch_shapes=[pltpu.VMEM((rows_pb, inner), wdt)],
        compiler_params=pltpu.CompilerParams(
            dimension_semantics=("parallel", "arbitrary"),
            vmem_limit_bytes=vmem_limit),
    )(x.reshape(B * N, D), *weights)

    return out2.reshape(B, N, D)
    # TODO(synk): pad D / inner / N to (128, 8) multiples with softmax & LN
    # masking for fully lane-dense stores when the model dims are not aligned.


# ---------------------------------------------------------------------------
# Pure-JAX reference (for correctness checking only; not a Pallas kernel)
# ---------------------------------------------------------------------------

def _reference_forward(x, params):
    def ln(v, g, b, eps=1e-12):
        mu = jnp.mean(v, -1, keepdims=True)
        var = jnp.mean((v - mu) ** 2, -1, keepdims=True)
        return (v - mu) / jnp.sqrt(var + eps) * g + b

    B, N, D = x.shape
    for p in params:
        H = int(p["heads"])
        inner = p["wq"].shape[1]
        dh = inner // H
        q = x @ p["wq"] + p["bq"]
        k = x @ p["wk"] + p["bk"]
        v = x @ p["wv"] + p["bv"]
        q = q.reshape(B, N, H, dh).transpose(0, 2, 1, 3)
        k = k.reshape(B, N, H, dh).transpose(0, 2, 1, 3)
        v = v.reshape(B, N, H, dh).transpose(0, 2, 1, 3)
        s = jnp.einsum("bhnd,bhmd->bhnm", q, k) / jnp.sqrt(jnp.float32(dh))
        a = jax.nn.softmax(s, axis=-1)
        o = jnp.einsum("bhnm,bhmd->bhnd", a, v).transpose(0, 2, 1, 3).reshape(B, N, inner)
        o = o @ p["wo"] + p["bo"]
        y = ln(o + x, p["g1"], p["be1"])
        h1 = jax.nn.gelu(y @ p["w1"] + p["b1"], approximate=False)
        h2 = h1 @ p["w2"] + p["b2"]
        x = ln(h2 + y, p["g2"], p["be2"])
    return x


# ---------------------------------------------------------------------------
# Deterministic parameter init (PyTorch-Linear-style uniform bounds, synthetic)
# ---------------------------------------------------------------------------

def init_params(key, lays, dim, heads, inner_dim, pox=4):
    assert dim % heads == 0 and inner_dim % heads == 0
    hidden = pox * dim

    def linear(k, fan_in, fan_out):
        bound = 1.0 / math.sqrt(fan_in)
        kw, kb = jax.random.split(k)
        # stored as (in, out) so the kernel computes x @ W + b (== x @ W_pt.T + b)
        w = jax.random.uniform(kw, (fan_in, fan_out), jnp.float32, -bound, bound)
        b = jax.random.uniform(kb, (1, fan_out), jnp.float32, -bound, bound)
        return w, b

    params = []
    for i in range(lays):
        ks = jax.random.split(jax.random.fold_in(key, i), 6)
        wq, bq = linear(ks[0], dim, inner_dim)
        wk, bk = linear(ks[1], dim, inner_dim)
        wv, bv = linear(ks[2], dim, inner_dim)
        wo, bo = linear(ks[3], inner_dim, dim)
        w1, b1 = linear(ks[4], dim, hidden)
        w2, b2 = linear(ks[5], hidden, dim)
        params.append(dict(
            heads=heads,
            wq=wq, bq=bq, wk=wk, bk=bk, wv=wv, bv=bv, wo=wo, bo=bo,
            g1=jnp.ones((1, dim), jnp.float32), be1=jnp.zeros((1, dim), jnp.float32),
            w1=w1, b1=b1, w2=w2, b2=b2,
            g2=jnp.ones((1, dim), jnp.float32), be2=jnp.zeros((1, dim), jnp.float32),
        ))
    return params


if __name__ == "__main__":
    # Small shapes consistent with the module: lays=2, dim=32, heads=4,
    # inner_dim=32, pox=4, batch=2, seq=8.
    LAYS, DIM, HEADS, INNER, POX = 2, 32, 4, 32, 4
    B, N = 2, 8

    key = jax.random.PRNGKey(0)
    kx, kp = jax.random.split(key)
    x = jax.random.normal(kx, (B, N, DIM), jnp.float32)
    params = init_params(kp, LAYS, DIM, HEADS, INNER, POX)

    ref = _reference_forward(x, params)

    # f32 matmul path (reference-exact numerics).
    out = self_attention_forward(x, params)
    jax.block_until_ready(out)
    err = float(jnp.max(jnp.abs(out - ref)))
    assert out.shape == (B, N, DIM) and out.dtype == jnp.float32
    assert bool(jnp.all(jnp.isfinite(out)))
    assert err < 2e-2, f"f32 path mismatch vs pure-JAX reference: max abs err {err}"

    # bf16-operand path (what you would run on v6e / v7x).
    out_bf16 = self_attention_forward(x, params, mm_dtype=jnp.bfloat16)
    jax.block_until_ready(out_bf16)
    err_bf16 = float(jnp.max(jnp.abs(out_bf16 - ref)))
    assert bool(jnp.all(jnp.isfinite(out_bf16)))
    assert err_bf16 < 2e-1, f"bf16 path mismatch vs pure-JAX reference: max abs err {err_bf16}"

    print("KERNEL_OK")
</pallas_src>

<mosaic_0001>
module attributes {stable_mosaic.version = 11 : i64} {
  func.func @_encoder_stack_kernel(%arg0: i32, %arg1: i32, %arg2: memref<8x32xf32, #tpu.memory_space<vmem>>, %arg3: memref<1x32x32xf32, #tpu.memory_space<vmem>>, %arg4: memref<1x1x32xf32, #tpu.memory_space<vmem>>, %arg5: memref<1x32x32xf32, #tpu.memory_space<vmem>>, %arg6: memref<1x1x32xf32, #tpu.memory_space<vmem>>, %arg7: memref<1x32x32xf32, #tpu.memory_space<vmem>>, %arg8: memref<1x1x32xf32, #tpu.memory_space<vmem>>, %arg9: memref<1x32x32xf32, #tpu.memory_space<vmem>>, %arg10: memref<1x1x32xf32, #tpu.memory_space<vmem>>, %arg11: memref<1x1x32xf32, #tpu.memory_space<vmem>>, %arg12: memref<1x1x32xf32, #tpu.memory_space<vmem>>, %arg13: memref<1x32x128xf32, #tpu.memory_space<vmem>>, %arg14: memref<1x1x128xf32, #tpu.memory_space<vmem>>, %arg15: memref<1x128x32xf32, #tpu.memory_space<vmem>>, %arg16: memref<1x1x32xf32, #tpu.memory_space<vmem>>, %arg17: memref<1x1x32xf32, #tpu.memory_space<vmem>>, %arg18: memref<1x1x32xf32, #tpu.memory_space<vmem>>, %arg19: memref<8x32xf32, #tpu.memory_space<vmem>>, %arg20: memref<8x32xf32, #tpu.memory_space<vmem>>) attributes {dimension_semantics = [#tpu.dimension_semantics<parallel>, #tpu.dimension_semantics<arbitrary>], iteration_bounds = array<i64: 2, 2>, scalar_prefetch = 0 : i64, scratch_operands = 1 : i64, tpu.core_type = #tpu.core_type<tc>, window_params = [{transform_indices = @transform_0, window_bounds = array<i64: 8, 32>}, {transform_indices = @transform_1, window_bounds = array<i64: 1, 32, 32>}, {transform_indices = @transform_2, window_bounds = array<i64: 1, 1, 32>}, {transform_indices = @transform_3, window_bounds = array<i64: 1, 32, 32>}, {transform_indices = @transform_4, window_bounds = array<i64: 1, 1, 32>}, {transform_indices = @transform_5, window_bounds = array<i64: 1, 32, 32>}, {transform_indices = @transform_6, window_bounds = array<i64: 1, 1, 32>}, {transform_indices = @transform_7, window_bounds = array<i64: 1, 32, 32>}, {transform_indices = @transform_8, window_bounds = array<i64: 1, 1, 32>}, {transform_indices = @transform_9, window_bounds = array<i64: 1, 1, 32>}, {transform_indices = @transform_10, window_bounds = array<i64: 1, 1, 32>}, {transform_indices = @transform_11, window_bounds = array<i64: 1, 32, 128>}, {transform_indices = @transform_12, window_bounds = array<i64: 1, 1, 128>}, {transform_indices = @transform_13, window_bounds = array<i64: 1, 128, 32>}, {transform_indices = @transform_14, window_bounds = array<i64: 1, 1, 32>}, {transform_indices = @transform_15, window_bounds = array<i64: 1, 1, 32>}, {transform_indices = @transform_16, window_bounds = array<i64: 1, 1, 32>}, {transform_indices = @transform_17, window_bounds = array<i64: 8, 32>}]} {
    %c0_i32 = arith.constant 0 : i32
    %0 = arith.cmpi eq, %arg1, %c0_i32 : i32
    %1 = arith.extui %0 : i1 to i32
    %c0_i32_0 = arith.constant 0 : i32
    %2 = arith.cmpi ne, %1, %c0_i32_0 : i32
    scf.if %2 {
      %c0_108 = arith.constant 0 : index
      %c0_109 = arith.constant 0 : index
      %227 = vector.load %arg2[%c0_108, %c0_109] : memref<8x32xf32, #tpu.memory_space<vmem>>, vector<8x32xf32>
      %c0_110 = arith.constant 0 : index
      %c0_111 = arith.constant 0 : index
      %228 = vector.load %arg19[%c0_110, %c0_111] : memref<8x32xf32, #tpu.memory_space<vmem>>, vector<8x32xf32>
      tpu.vector_store %arg19[%c0_110, %c0_111], %227 {strides = array<i32>} : memref<8x32xf32, #tpu.memory_space<vmem>>, vector<8x32xf32>,
    } else {
    }
    %c0 = arith.constant 0 : index
    %c0_1 = arith.constant 0 : index
    %3 = vector.load %arg19[%c0, %c0_1] : memref<8x32xf32, #tpu.memory_space<vmem>>, vector<8x32xf32>
    %c0_2 = arith.constant 0 : index
    %c0_3 = arith.constant 0 : index
    %c0_4 = arith.constant 0 : index
    %4 = vector.load %arg3[%c0_2, %c0_3, %c0_4] : memref<1x32x32xf32, #tpu.memory_space<vmem>>, vector<1x32x32xf32>
    %5 = vector.shape_cast %4 : vector<1x32x32xf32> to vector<32x32xf32>
    %cst = arith.constant dense<0.000000e+00> : vector<8x32xf32>
    %6 = tpu.matmul %3, %5, %cst {dimension_numbers = #tpu.dot_dimension_numbers<[1], [0], [0], [1], [0, 0, 1, 1], [], []>} : vector<8x32xf32>, vector<32x32xf32>, vector<8x32xf32> -> vector<8x32xf32>
    %c0_5 = arith.constant 0 : index
    %c0_6 = arith.constant 0 : index
    %c0_7 = arith.constant 0 : index
    %7 = vector.load %arg4[%c0_5, %c0_6, %c0_7] : memref<1x1x32xf32, #tpu.memory_space<vmem>>, vector<1x1x32xf32>
    %8 = vector.shape_cast %7 : vector<1x1x32xf32> to vector<1x32xf32>
    %9 = vector.broadcast %8 : vector<1x32xf32> to vector<8x32xf32>
    %10 = arith.addf %6, %9 : vector<8x32xf32>
    %c0_8 = arith.constant 0 : index
    %c0_9 = arith.constant 0 : index
    %c0_10 = arith.constant 0 : index
    %11 = vector.load %arg5[%c0_8, %c0_9, %c0_10] : memref<1x32x32xf32, #tpu.memory_space<vmem>>, vector<1x32x32xf32>
    %12 = vector.shape_cast %11 : vector<1x32x32xf32> to vector<32x32xf32>
    %cst_11 = arith.constant dense<0.000000e+00> : vector<8x32xf32>
    %13 = tpu.matmul %3, %12, %cst_11 {dimension_numbers = #tpu.dot_dimension_numbers<[1], [0], [0], [1], [0, 0, 1, 1], [], []>} : vector<8x32xf32>, vector<32x32xf32>, vector<8x32xf32> -> vector<8x32xf32>
    %c0_12 = arith.constant 0 : index
    %c0_13 = arith.constant 0 : index
    %c0_14 = arith.constant 0 : index
    %14 = vector.load %arg6[%c0_12, %c0_13, %c0_14] : memref<1x1x32xf32, #tpu.memory_space<vmem>>, vector<1x1x32xf32>
    %15 = vector.shape_cast %14 : vector<1x1x32xf32> to vector<1x32xf32>
    %16 = vector.broadcast %15 : vector<1x32xf32> to vector<8x32xf32>
    %17 = arith.addf %13, %16 : vector<8x32xf32>
    %c0_15 = arith.constant 0 : index
    %c0_16 = arith.constant 0 : index
    %c0_17 = arith.constant 0 : index
    %18 = vector.load %arg7[%c0_15, %c0_16, %c0_17] : memref<1x32x32xf32, #tpu.memory_space<vmem>>, vector<1x32x32xf32>
    %19 = vector.shape_cast %18 : vector<1x32x32xf32> to vector<32x32xf32>
    %cst_18 = arith.constant dense<0.000000e+00> : vector<8x32xf32>
    %20 = tpu.matmul %3, %19, %cst_18 {dimension_numbers = #tpu.dot_dimension_numbers<[1], [0], [0], [1], [0, 0, 1, 1], [], []>} : vector<8x32xf32>, vector<32x32xf32>, vector<8x32xf32> -> vector<8x32xf32>
    %c0_19 = arith.constant 0 : index
    %c0_20 = arith.constant 0 : index
    %c0_21 = arith.constant 0 : index
    %21 = vector.load %arg8[%c0_19, %c0_20, %c0_21] : memref<1x1x32xf32, #tpu.memory_space<vmem>>, vector<1x1x32xf32>
    %22 = vector.shape_cast %21 : vector<1x1x32xf32> to vector<1x32xf32>
    %23 = vector.broadcast %22 : vector<1x32xf32> to vector<8x32xf32>
    %24 = arith.addf %20, %23 : vector<8x32xf32>
    %25 = vector.extract_strided_slice %10 {offsets = [0, 0], sizes = [8, 8], strides = [1, 1]} : vector<8x32xf32> to vector<8x8xf32>
    %26 = vector.shape_cast %25 : vector<8x8xf32> to vector<1x8x8xf32>
    %27 = vector.extract_strided_slice %17 {offsets = [0, 0], sizes = [8, 8], strides = [1, 1]} : vector<8x32xf32> to vector<8x8xf32>
    %28 = vector.shape_cast %27 : vector<8x8xf32> to vector<1x8x8xf32>
    %29 = vector.extract_strided_slice %24 {offsets = [0, 0], sizes = [8, 8], strides = [1, 1]} : vector<8x32xf32> to vector<8x8xf32>
    %30 = vector.shape_cast %29 : vector<8x8xf32> to vector<1x8x8xf32>
    "tpu.trace_start"() <{level = 10 : i32, message = "bnd,bmd->bnm"}> : () -> ()
    %cst_22 = arith.constant dense<0.000000e+00> : vector<1x8x8xf32>
    %31 = tpu.matmul %26, %28, %cst_22 {dimension_numbers = #tpu.dot_dimension_numbers<[2], [2], [1], [1], [0, 0, 0, 1, 1, 1], [0], [0]>} : vector<1x8x8xf32>, vector<1x8x8xf32>, vector<1x8x8xf32> -> vector<1x8x8xf32>
    "tpu.trace_stop"() : () -> ()
    %cst_23 = arith.constant dense<0xFF800000> : vector<1x8xf32>
    %32 = vector.multi_reduction <maximumf>, %31, %cst_23 [2] : vector<1x8x8xf32> to vector<1x8xf32>
    %33 = vector.shape_cast %32 : vector<1x8xf32> to vector<1x8x1xf32>
    %34 = vector.broadcast %33 : vector<1x8x1xf32> to vector<1x8x8xf32>
    %35 = arith.subf %31, %34 : vector<1x8x8xf32>
    %36 = math.exp %35 : vector<1x8x8xf32>
    %cst_24 = arith.constant dense<0.000000e+00> : vector<1x8xf32>
    %37 = vector.multi_reduction <add>, %36, %cst_24 [2] : vector<1x8x8xf32> to vector<1x8xf32>
    %38 = vector.shape_cast %37 : vector<1x8xf32> to vector<1x8x1xf32>
    %39 = tpu.reciprocal %38 {approx = true} : vector<1x8x1xf32> -> vector<1x8x1xf32>
    %40 = vector.broadcast %39 : vector<1x8x1xf32> to vector<1x8x8xf32>
    %41 = arith.mulf %36, %40 : vector<1x8x8xf32>
    "tpu.trace_start"() <{level = 10 : i32, message = "bnm,bmd->bnd"}> : () -> ()
    %cst_25 = arith.constant dense<0.000000e+00> : vector<1x8x8xf32>
    %42 = tpu.matmul %41, %30, %cst_25 {dimension_numbers = #tpu.dot_dimension_numbers<[2], [1], [1], [2], [0, 0, 0, 1, 1, 2], [0], [0]>} : vector<1x8x8xf32>, vector<1x8x8xf32>, vector<1x8x8xf32> -> vector<1x8x8xf32>
    "tpu.trace_stop"() : () -> ()
    %43 = vector.shape_cast %42 : vector<1x8x8xf32> to vector<8x8xf32>
    %c0_26 = arith.constant 0 : index
    %c0_27 = arith.constant 0 : index
    %44 = vector.load %arg20[%c0_26, %c0_27] : memref<8x32xf32, #tpu.memory_space<vmem>>, vector<8x8xf32>
    tpu.vector_store %arg20[%c0_26, %c0_27], %43 {strides = array<i32>} : memref<8x32xf32, #tpu.memory_space<vmem>>, vector<8x8xf32>,
    %45 = vector.extract_strided_slice %10 {offsets = [0, 8], sizes = [8, 8], strides = [1, 1]} : vector<8x32xf32> to vector<8x8xf32>
    %46 = vector.shape_cast %45 : vector<8x8xf32> to vector<1x8x8xf32>
    %47 = vector.extract_strided_slice %17 {offsets = [0, 8], sizes = [8, 8], strides = [1, 1]} : vector<8x32xf32> to vector<8x8xf32>
    %48 = vector.shape_cast %47 : vector<8x8xf32> to vector<1x8x8xf32>
    %49 = vector.extract_strided_slice %24 {offsets = [0, 8], sizes = [8, 8], strides = [1, 1]} : vector<8x32xf32> to vector<8x8xf32>
    %50 = vector.shape_cast %49 : vector<8x8xf32> to vector<1x8x8xf32>
    "tpu.trace_start"() <{level = 10 : i32, message = "bnd,bmd->bnm"}> : () -> ()
    %cst_28 = arith.constant dense<0.000000e+00> : vector<1x8x8xf32>
    %51 = tpu.matmul %46, %48, %cst_28 {dimension_numbers = #tpu.dot_dimension_numbers<[2], [2], [1], [1], [0, 0, 0, 1, 1, 1], [0], [0]>} : vector<1x8x8xf32>, vector<1x8x8xf32>, vector<1x8x8xf32> -> vector<1x8x8xf32>
    "tpu.trace_stop"() : () -> ()
    %cst_29 = arith.constant dense<0xFF800000> : vector<1x8xf32>
    %52 = vector.multi_reduction <maximumf>, %51, %cst_29 [2] : vector<1x8x8xf32> to vector<1x8xf32>
    %53 = vector.shape_cast %52 : vector<1x8xf32> to vector<1x8x1xf32>
    %54 = vector.broadcast %53 : vector<1x8x1xf32> to vector<1x8x8xf32>
    %55 = arith.subf %51, %54 : vector<1x8x8xf32>
    %56 = math.exp %55 : vector<1x8x8xf32>
    %cst_30 = arith.constant dense<0.000000e+00> : vector<1x8xf32>
    %57 = vector.multi_reduction <add>, %56, %cst_30 [2] : vector<1x8x8xf32> to vector<1x8xf32>
    %58 = vector.shape_cast %57 : vector<1x8xf32> to vector<1x8x1xf32>
    %59 = tpu.reciprocal %58 {approx = true} : vector<1x8x1xf32> -> vector<1x8x1xf32>
    %60 = vector.broadcast %59 : vector<1x8x1xf32> to vector<1x8x8xf32>
    %61 = arith.mulf %56, %60 : vector<1x8x8xf32>
    "tpu.trace_start"() <{level = 10 : i32, message = "bnm,bmd->bnd"}> : () -> ()
    %cst_31 = arith.constant dense<0.000000e+00> : vector<1x8x8xf32>
    %62 = tpu.matmul %61, %50, %cst_31 {dimension_numbers = #tpu.dot_dimension_numbers<[2], [1], [1], [2], [0, 0, 0, 1, 1, 2], [0], [0]>} : vector<1x8x8xf32>, vector<1x8x8xf32>, vector<1x8x8xf32> -> vector<1x8x8xf32>
    "tpu.trace_stop"() : () -> ()
    %63 = vector.shape_cast %62 : vector<1x8x8xf32> to vector<8x8xf32>
    %c0_32 = arith.constant 0 : index
    %c8 = arith.constant 8 : index
    %64 = vector.load %arg20[%c0_32, %c8] : memref<8x32xf32, #tpu.memory_space<vmem>>, vector<8x8xf32>
    tpu.vector_store %arg20[%c0_32, %c8], %63 {strides = array<i32>} : memref<8x32xf32, #tpu.memory_space<vmem>>, vector<8x8xf32>,
    %65 = vector.extract_strided_slice %10 {offsets = [0, 16], sizes = [8, 8], strides = [1, 1]} : vector<8x32xf32> to vector<8x8xf32>
    %66 = vector.shape_cast %65 : vector<8x8xf32> to vector<1x8x8xf32>
    %67 = vector.extract_strided_slice %17 {offsets = [0, 16], sizes = [8, 8], strides = [1, 1]} : vector<8x32xf32> to vector<8x8xf32>
    %68 = vector.shape_cast %67 : vector<8x8xf32> to vector<1x8x8xf32>
    %69 = vector.extract_strided_slice %24 {offsets = [0, 16], sizes = [8, 8], strides = [1, 1]} : vector<8x32xf32> to vector<8x8xf32>
    %70 = vector.shape_cast %69 : vector<8x8xf32> to vector<1x8x8xf32>
    "tpu.trace_start"() <{level = 10 : i32, message = "bnd,bmd->bnm"}> : () -> ()
    %cst_33 = arith.constant dense<0.000000e+00> : vector<1x8x8xf32>
    %71 = tpu.matmul %66, %68, %cst_33 {dimension_numbers = #tpu.dot_dimension_numbers<[2], [2], [1], [1], [0, 0, 0, 1, 1, 1], [0], [0]>} : vector<1x8x8xf32>, vector<1x8x8xf32>, vector<1x8x8xf32> -> vector<1x8x8xf32>
    "tpu.trace_stop"() : () -> ()
    %cst_34 = arith.constant dense<0xFF800000> : vector<1x8xf32>
    %72 = vector.multi_reduction <maximumf>, %71, %cst_34 [2] : vector<1x8x8xf32> to vector<1x8xf32>
    %73 = vector.shape_cast %72 : vector<1x8xf32> to vector<1x8x1xf32>
    %74 = vector.broadcast %73 : vector<1x8x1xf32> to vector<1x8x8xf32>
    %75 = arith.subf %71, %74 : vector<1x8x8xf32>
    %76 = math.exp %75 : vector<1x8x8xf32>
    %cst_35 = arith.constant dense<0.000000e+00> : vector<1x8xf32>
    %77 = vector.multi_reduction <add>, %76, %cst_35 [2] : vector<1x8x8xf32> to vector<1x8xf32>
    %78 = vector.shape_cast %77 : vector<1x8xf32> to vector<1x8x1xf32>
    %79 = tpu.reciprocal %78 {approx = true} : vector<1x8x1xf32> -> vector<1x8x1xf32>
    %80 = vector.broadcast %79 : vector<1x8x1xf32> to vector<1x8x8xf32>
    %81 = arith.mulf %76, %80 : vector<1x8x8xf32>
    "tpu.trace_start"() <{level = 10 : i32, message = "bnm,bmd->bnd"}> : () -> ()
    %cst_36 = arith.constant dense<0.000000e+00> : vector<1x8x8xf32>
    %82 = tpu.matmul %81, %70, %cst_36 {dimension_numbers = #tpu.dot_dimension_numbers<[2], [1], [1], [2], [0, 0, 0, 1, 1, 2], [0], [0]>} : vector<1x8x8xf32>, vector<1x8x8xf32>, vector<1x8x8xf32> -> vector<1x8x8xf32>
    "tpu.trace_stop"() : () -> ()
    %83 = vector.shape_cast %82 : vector<1x8x8xf32> to vector<8x8xf32>
    %c0_37 = arith.constant 0 : index
    %c16 = arith.constant 16 : index
    %84 = vector.load %arg20[%c0_37, %c16] : memref<8x32xf32, #tpu.memory_space<vmem>>, vector<8x8xf32>
    tpu.vector_store %arg20[%c0_37, %c16], %83 {strides = array<i32>} : memref<8x32xf32, #tpu.memory_space<vmem>>, vector<8x8xf32>,
    %85 = vector.extract_strided_slice %10 {offsets = [0, 24], sizes = [8, 8], strides = [1, 1]} : vector<8x32xf32> to vector<8x8xf32>
    %86 = vector.shape_cast %85 : vector<8x8xf32> to vector<1x8x8xf32>
    %87 = vector.extract_strided_slice %17 {offsets = [0, 24], sizes = [8, 8], strides = [1, 1]} : vector<8x32xf32> to vector<8x8xf32>
    %88 = vector.shape_cast %87 : vector<8x8xf32> to vector<1x8x8xf32>
    %89 = vector.extract_strided_slice %24 {offsets = [0, 24], sizes = [8, 8], strides = [1, 1]} : vector<8x32xf32> to vector<8x8xf32>
    %90 = vector.shape_cast %89 : vector<8x8xf32> to vector<1x8x8xf32>
    "tpu.trace_start"() <{level = 10 : i32, message = "bnd,bmd->bnm"}> : () -> ()
    %cst_38 = arith.constant dense<0.000000e+00> : vector<1x8x8xf32>
    %91 = tpu.matmul %86, %88, %cst_38 {dimension_numbers = #tpu.dot_dimension_numbers<[2], [2], [1], [1], [0, 0, 0, 1, 1, 1], [0], [0]>} : vector<1x8x8xf32>, vector<1x8x8xf32>, vector<1x8x8xf32> -> vector<1x8x8xf32>
    "tpu.trace_stop"() : () -> ()
    %cst_39 = arith.constant dense<0xFF800000> : vector<1x8xf32>
    %92 = vector.multi_reduction <maximumf>, %91, %cst_39 [2] : vector<1x8x8xf32> to vector<1x8xf32>
    %93 = vector.shape_cast %92 : vector<1x8xf32> to vector<1x8x1xf32>
    %94 = vector.broadcast %93 : vector<1x8x1xf32> to vector<1x8x8xf32>
    %95 = arith.subf %91, %94 : vector<1x8x8xf32>
    %96 = math.exp %95 : vector<1x8x8xf32>
    %cst_40 = arith.constant dense<0.000000e+00> : vector<1x8xf32>
    %97 = vector.multi_reduction <add>, %96, %cst_40 [2] : vector<1x8x8xf32> to vector<1x8xf32>
    %98 = vector.shape_cast %97 : vector<1x8xf32> to vector<1x8x1xf32>
    %99 = tpu.reciprocal %98 {approx = true} : vector<1x8x1xf32> -> vector<1x8x1xf32>
    %100 = vector.broadcast %99 : vector<1x8x1xf32> to vector<1x8x8xf32>
    %101 = arith.mulf %96, %100 : vector<1x8x8xf32>
    "tpu.trace_start"() <{level = 10 : i32, message = "bnm,bmd->bnd"}> : () -> ()
    %cst_41 = arith.constant dense<0.000000e+00> : vector<1x8x8xf32>
    %102 = tpu.matmul %101, %90, %cst_41 {dimension_numbers = #tpu.dot_dimension_numbers<[2], [1], [1], [2], [0, 0, 0, 1, 1, 2], [0], [0]>} : vector<1x8x8xf32>, vector<1x8x8xf32>, vector<1x8x8xf32> -> vector<1x8x8xf32>
    "tpu.trace_stop"() : () -> ()
    %103 = vector.shape_cast %102 : vector<1x8x8xf32> to vector<8x8xf32>
    %c0_42 = arith.constant 0 : index
    %c24 = arith.constant 24 : index
    %104 = vector.load %arg20[%c0_42, %c24] : memref<8x32xf32, #tpu.memory_space<vmem>>, vector<8x8xf32>
    tpu.vector_store %arg20[%c0_42, %c24], %103 {strides = array<i32>} : memref<8x32xf32, #tpu.memory_space<vmem>>, vector<8x8xf32>,
    %c0_43 = arith.constant 0 : index
    %c0_44 = arith.constant 0 : index
    %105 = vector.load %arg20[%c0_43, %c0_44] : memref<8x32xf32, #tpu.memory_space<vmem>>, vector<8x32xf32>
    %c0_45 = arith.constant 0 : index
    %c0_46 = arith.constant 0 : index
    %c0_47 = arith.constant 0 : index
    %106 = vector.load %arg9[%c0_45, %c0_46, %c0_47] : memref<1x32x32xf32, #tpu.memory_space<vmem>>, vector<1x32x32xf32>
    %107 = vector.shape_cast %106 : vector<1x32x32xf32> to vector<32x32xf32>
    %cst_48 = arith.constant dense<0.000000e+00> : vector<8x32xf32>
    %108 = tpu.matmul %105, %107, %cst_48 {dimension_numbers = #tpu.dot_dimension_numbers<[1], [0], [0], [1], [0, 0, 1, 1], [], []>} : vector<8x32xf32>, vector<32x32xf32>, vector<8x32xf32> -> vector<8x32xf32>
    %c0_49 = arith.constant 0 : index
    %c0_50 = arith.constant 0 : index
    %c0_51 = arith.constant 0 : index
    %109 = vector.load %arg10[%c0_49, %c0_50, %c0_51] : memref<1x1x32xf32, #tpu.memory_space<vmem>>, vector<1x1x32xf32>
    %110 = vector.shape_cast %109 : vector<1x1x32xf32> to vector<1x32xf32>
    %111 = vector.broadcast %110 : vector<1x32xf32> to vector<8x32xf32>
    %112 = arith.addf %108, %111 : vector<8x32xf32>
    %113 = arith.addf %112, %3 : vector<8x32xf32>
    %c0_52 = arith.constant 0 : index
    %c0_53 = arith.constant 0 : index
    %c0_54 = arith.constant 0 : index
    %114 = vector.load %arg11[%c0_52, %c0_53, %c0_54] : memref<1x1x32xf32, #tpu.memory_space<vmem>>, vector<1x1x32xf32>
    %115 = vector.shape_cast %114 : vector<1x1x32xf32> to vector<1x32xf32>
    %c0_55 = arith.constant 0 : index
    %c0_56 = arith.constant 0 : index
    %c0_57 = arith.constant 0 : index
    %116 = vector.load %arg12[%c0_55, %c0_56, %c0_57] : memref<1x1x32xf32, #tpu.memory_space<vmem>>, vector<1x1x32xf32>
    %117 = vector.shape_cast %116 : vector<1x1x32xf32> to vector<1x32xf32>
    %cst_58 = arith.constant dense<0.000000e+00> : vector<8xf32>
    %118 = vector.multi_reduction <add>, %113, %cst_58 [1] : vector<8x32xf32> to vector<8xf32>
    %119 = vector.shape_cast %118 : vector<8xf32> to vector<8x1xf32>
    %cst_59 = arith.constant 3.125000e-02 : f32
    %120 = vector.broadcast %cst_59 : f32 to vector<8x1xf32>
    %121 = arith.mulf %119, %120 : vector<8x1xf32>
    %122 = arith.mulf %113, %113 : vector<8x32xf32>
    %cst_60 = arith.constant dense<0.000000e+00> : vector<8xf32>
    %123 = vector.multi_reduction <add>, %122, %cst_60 [1] : vector<8x32xf32> to vector<8xf32>
    %124 = vector.shape_cast %123 : vector<8xf32> to vector<8x1xf32>
    %cst_61 = arith.constant 3.125000e-02 : f32
    %125 = vector.broadcast %cst_61 : f32 to vector<8x1xf32>
    %126 = arith.mulf %124, %125 : vector<8x1xf32>
    %127 = arith.mulf %121, %121 : vector<8x1xf32>
    %128 = arith.subf %126, %127 : vector<8x1xf32>
    %cst_62 = arith.constant 0.000000e+00 : f32
    %129 = vector.broadcast %cst_62 : f32 to vector<8x1xf32>
    %130 = arith.maximumf %128, %129 : vector<8x1xf32>
    %131 = vector.broadcast %121 : vector<8x1xf32> to vector<8x32xf32>
    %132 = arith.subf %113, %131 : vector<8x32xf32>
    %cst_63 = arith.constant 9.99999996E-13 : f32
    %133 = vector.broadcast %cst_63 : f32 to vector<8x1xf32>
    %134 = arith.addf %130, %133 : vector<8x1xf32>
    %135 = math.rsqrt %134 : vector<8x1xf32>
    %136 = vector.broadcast %135 : vector<8x1xf32> to vector<8x32xf32>
    %137 = arith.mulf %132, %136 : vector<8x32xf32>
    %138 = vector.broadcast %115 : vector<1x32xf32> to vector<8x32xf32>
    %139 = arith.mulf %137, %138 : vector<8x32xf32>
    %140 = vector.broadcast %117 : vector<1x32xf32> to vector<8x32xf32>
    %141 = arith.addf %139, %140 : vector<8x32xf32>
    %c0_64 = arith.constant 0 : index
    %c0_65 = arith.constant 0 : index
    %c0_66 = arith.constant 0 : index
    %142 = vector.load %arg13[%c0_64, %c0_65, %c0_66] : memref<1x32x128xf32, #tpu.memory_space<vmem>>, vector<1x32x128xf32>
    %143 = vector.shape_cast %142 : vector<1x32x128xf32> to vector<32x128xf32>
    %cst_67 = arith.constant dense<0.000000e+00> : vector<8x128xf32>
    %144 = tpu.matmul %141, %143, %cst_67 {dimension_numbers = #tpu.dot_dimension_numbers<[1], [0], [0], [1], [0, 0, 1, 1], [], []>} : vector<8x32xf32>, vector<32x128xf32>, vector<8x128xf32> -> vector<8x128xf32>
    %c0_68 = arith.constant 0 : index
    %c0_69 = arith.constant 0 : index
    %c0_70 = arith.constant 0 : index
    %145 = vector.load %arg14[%c0_68, %c0_69, %c0_70] : memref<1x1x128xf32, #tpu.memory_space<vmem>>, vector<1x1x128xf32>
    %146 = vector.shape_cast %145 : vector<1x1x128xf32> to vector<1x128xf32>
    %147 = vector.broadcast %146 : vector<1x128xf32> to vector<8x128xf32>
    %148 = arith.addf %144, %147 : vector<8x128xf32>
    %cst_71 = arith.constant 5.000000e-01 : f32
    %149 = vector.broadcast %cst_71 : f32 to vector<8x128xf32>
    %150 = arith.mulf %149, %148 : vector<8x128xf32>
    %cst_72 = arith.constant 0.707106769 : f32
    %151 = vector.broadcast %cst_72 : f32 to vector<8x128xf32>
    %152 = arith.mulf %148, %151 : vector<8x128xf32>
    %cst_73 = arith.constant 0.000000e+00 : f32
    %153 = vector.broadcast %cst_73 : f32 to vector<8x128xf32>
    %154 = arith.cmpf oge, %152, %153 : vector<8x128xf32>
    %cst_74 = arith.constant 1.000000e+00 : f32
    %cst_75 = arith.constant -1.000000e+00 : f32
    %155 = vector.broadcast %cst_74 : f32 to vector<8x128xf32>
    %156 = vector.broadcast %cst_75 : f32 to vector<8x128xf32>
    %157 = arith.select %154, %155, %156 : vector<8x128xi1>, vector<8x128xf32>
    %158 = math.absf %152 : vector<8x128xf32>
    %cst_76 = arith.constant 0.327591091 : f32
    %159 = vector.broadcast %cst_76 : f32 to vector<8x128xf32>
    %160 = arith.mulf %159, %158 : vector<8x128xf32>
    %cst_77 = arith.constant 1.000000e+00 : f32
    %161 = vector.broadcast %cst_77 : f32 to vector<8x128xf32>
    %162 = arith.addf %161, %160 : vector<8x128xf32>
    %cst_78 = arith.constant 1.000000e+00 : f32
    %163 = vector.broadcast %cst_78 : f32 to vector<8x128xf32>
    %164 = arith.divf %163, %162 : vector<8x128xf32>
    %cst_79 = arith.constant 1.06140542 : f32
    %165 = vector.broadcast %cst_79 : f32 to vector<8x128xf32>
    %166 = arith.mulf %165, %164 : vector<8x128xf32>
    %cst_80 = arith.constant -1.45315206 : f32
    %167 = vector.broadcast %cst_80 : f32 to vector<8x128xf32>
    %168 = arith.addf %166, %167 : vector<8x128xf32>
    %169 = arith.mulf %168, %164 : vector<8x128xf32>
    %cst_81 = arith.constant 1.42141378 : f32
    %170 = vector.broadcast %cst_81 : f32 to vector<8x128xf32>
    %171 = arith.addf %169, %170 : vector<8x128xf32>
    %172 = arith.mulf %171, %164 : vector<8x128xf32>
    %cst_82 = arith.constant -0.284496725 : f32
    %173 = vector.broadcast %cst_82 : f32 to vector<8x128xf32>
    %174 = arith.addf %172, %173 : vector<8x128xf32>
    %175 = arith.mulf %174, %164 : vector<8x128xf32>
    %cst_83 = arith.constant 0.254829586 : f32
    %176 = vector.broadcast %cst_83 : f32 to vector<8x128xf32>
    %177 = arith.addf %175, %176 : vector<8x128xf32>
    %178 = arith.mulf %177, %164 : vector<8x128xf32>
    %cst_84 = arith.constant 0.000000e+00 : f32
    %179 = vector.broadcast %cst_84 : f32 to vector<8x128xf32>
    %180 = arith.subf %179, %158 : vector<8x128xf32>
    %181 = arith.mulf %180, %158 : vector<8x128xf32>
    %182 = math.exp %181 : vector<8x128xf32>
    %183 = arith.mulf %178, %182 : vector<8x128xf32>
    %cst_85 = arith.constant 1.000000e+00 : f32
    %184 = vector.broadcast %cst_85 : f32 to vector<8x128xf32>
    %185 = arith.subf %184, %183 : vector<8x128xf32>
    %186 = arith.mulf %157, %185 : vector<8x128xf32>
    %cst_86 = arith.constant 1.000000e+00 : f32
    %187 = vector.broadcast %cst_86 : f32 to vector<8x128xf32>
    %188 = arith.addf %187, %186 : vector<8x128xf32>
    %189 = arith.mulf %150, %188 : vector<8x128xf32>
    %c0_87 = arith.constant 0 : index
    %c0_88 = arith.constant 0 : index
    %c0_89 = arith.constant 0 : index
    %190 = vector.load %arg15[%c0_87, %c0_88, %c0_89] : memref<1x128x32xf32, #tpu.memory_space<vmem>>, vector<1x128x32xf32>
    %191 = vector.shape_cast %190 : vector<1x128x32xf32> to vector<128x32xf32>
    %cst_90 = arith.constant dense<0.000000e+00> : vector<8x32xf32>
    %192 = tpu.matmul %189, %191, %cst_90 {dimension_numbers = #tpu.dot_dimension_numbers<[1], [0], [0], [1], [0, 0, 1, 1], [], []>} : vector<8x128xf32>, vector<128x32xf32>, vector<8x32xf32> -> vector<8x32xf32>
    %c0_91 = arith.constant 0 : index
    %c0_92 = arith.constant 0 : index
    %c0_93 = arith.constant 0 : index
    %193 = vector.load %arg16[%c0_91, %c0_92, %c0_93] : memref<1x1x32xf32, #tpu.memory_space<vmem>>, vector<1x1x32xf32>
    %194 = vector.shape_cast %193 : vector<1x1x32xf32> to vector<1x32xf32>
    %195 = vector.broadcast %194 : vector<1x32xf32> to vector<8x32xf32>
    %196 = arith.addf %192, %195 : vector<8x32xf32>
    %197 = arith.addf %196, %141 : vector<8x32xf32>
    %c0_94 = arith.constant 0 : index
    %c0_95 = arith.constant 0 : index
    %c0_96 = arith.constant 0 : index
    %198 = vector.load %arg17[%c0_94, %c0_95, %c0_96] : memref<1x1x32xf32, #tpu.memory_space<vmem>>, vector<1x1x32xf32>
    %199 = vector.shape_cast %198 : vector<1x1x32xf32> to vector<1x32xf32>
    %c0_97 = arith.constant 0 : index
    %c0_98 = arith.constant 0 : index
    %c0_99 = arith.constant 0 : index
    %200 = vector.load %arg18[%c0_97, %c0_98, %c0_99] : memref<1x1x32xf32, #tpu.memory_space<vmem>>, vector<1x1x32xf32>
    %201 = vector.shape_cast %200 : vector<1x1x32xf32> to vector<1x32xf32>
    %cst_100 = arith.constant dense<0.000000e+00> : vector<8xf32>
    %202 = vector.multi_reduction <add>, %197, %cst_100 [1] : vector<8x32xf32> to vector<8xf32>
    %203 = vector.shape_cast %202 : vector<8xf32> to vector<8x1xf32>
    %cst_101 = arith.constant 3.125000e-02 : f32
    %204 = vector.broadcast %cst_101 : f32 to vector<8x1xf32>
    %205 = arith.mulf %203, %204 : vector<8x1xf32>
    %206 = arith.mulf %197, %197 : vector<8x32xf32>
    %cst_102 = arith.constant dense<0.000000e+00> : vector<8xf32>
    %207 = vector.multi_reduction <add>, %206, %cst_102 [1] : vector<8x32xf32> to vector<8xf32>
    %208 = vector.shape_cast %207 : vector<8xf32> to vector<8x1xf32>
    %cst_103 = arith.constant 3.125000e-02 : f32
    %209 = vector.broadcast %cst_103 : f32 to vector<8x1xf32>
    %210 = arith.mulf %208, %209 : vector<8x1xf32>
    %211 = arith.mulf %205, %205 : vector<8x1xf32>
    %212 = arith.subf %210, %211 : vector<8x1xf32>
    %cst_104 = arith.constant 0.000000e+00 : f32
    %213 = vector.broadcast %cst_104 : f32 to vector<8x1xf32>
    %214 = arith.maximumf %212, %213 : vector<8x1xf32>
    %215 = vector.broadcast %205 : vector<8x1xf32> to vector<8x32xf32>
    %216 = arith.subf %197, %215 : vector<8x32xf32>
    %cst_105 = arith.constant 9.99999996E-13 : f32
    %217 = vector.broadcast %cst_105 : f32 to vector<8x1xf32>
    %218 = arith.addf %214, %217 : vector<8x1xf32>
    %219 = math.rsqrt %218 : vector<8x1xf32>
    %220 = vector.broadcast %219 : vector<8x1xf32> to vector<8x32xf32>
    %221 = arith.mulf %216, %220 : vector<8x32xf32>
    %222 = vector.broadcast %199 : vector<1x32xf32> to vector<8x32xf32>
    %223 = arith.mulf %221, %222 : vector<8x32xf32>
    %224 = vector.broadcast %201 : vector<1x32xf32> to vector<8x32xf32>
    %225 = arith.addf %223, %224 : vector<8x32xf32>
    %c0_106 = arith.constant 0 : index
    %c0_107 = arith.constant 0 : index
    %226 = vector.load %arg19[%c0_106, %c0_107] : memref<8x32xf32, #tpu.memory_space<vmem>>, vector<8x32xf32>
    tpu.vector_store %arg19[%c0_106, %c0_107], %225 {strides = array<i32>} : memref<8x32xf32, #tpu.memory_space<vmem>>, vector<8x32xf32>,
    return
  }
  func.func @transform_0(%arg0: i32, %arg1: i32) -> (i32, i32) {
    %c0_i32 = arith.constant 0 : i32
    %c0_i32_0 = arith.constant 0 : i32
    return %arg0, %c0_i32 : i32, i32
  }
  func.func @transform_1(%arg0: i32, %arg1: i32) -> (i32, i32, i32) {
    %c0_i32 = arith.constant 0 : i32
    %c0_i32_0 = arith.constant 0 : i32
    %c0_i32_1 = arith.constant 0 : i32
    return %arg1, %c0_i32, %c0_i32_0 : i32, i32, i32
  }
  func.func @transform_2(%arg0: i32, %arg1: i32) -> (i32, i32, i32) {
    %c0_i32 = arith.constant 0 : i32
    %c0_i32_0 = arith.constant 0 : i32
    %c0_i32_1 = arith.constant 0 : i32
    return %arg1, %c0_i32, %c0_i32_0 : i32, i32, i32
  }
  func.func @transform_3(%arg0: i32, %arg1: i32) -> (i32, i32, i32) {
    %c0_i32 = arith.constant 0 : i32
    %c0_i32_0 = arith.constant 0 : i32
    %c0_i32_1 = arith.constant 0 : i32
    return %arg1, %c0_i32, %c0_i32_0 : i32, i32, i32
  }
  func.func @transform_4(%arg0: i32, %arg1: i32) -> (i32, i32, i32) {
    %c0_i32 = arith.constant 0 : i32
    %c0_i32_0 = arith.constant 0 : i32
    %c0_i32_1 = arith.constant 0 : i32
    return %arg1, %c0_i32, %c0_i32_0 : i32, i32, i32
  }
  func.func @transform_5(%arg0: i32, %arg1: i32) -> (i32, i32, i32) {
    %c0_i32 = arith.constant 0 : i32
    %c0_i32_0 = arith.constant 0 : i32
    %c0_i32_1 = arith.constant 0 : i32
    return %arg1, %c0_i32, %c0_i32_0 : i32, i32, i32
  }
  func.func @transform_6(%arg0: i32, %arg1: i32) -> (i32, i32, i32) {
    %c0_i32 = arith.constant 0 : i32
    %c0_i32_0 = arith.constant 0 : i32
    %c0_i32_1 = arith.constant 0 : i32
    return %arg1, %c0_i32, %c0_i32_0 : i32, i32, i32
  }
  func.func @transform_7(%arg0: i32, %arg1: i32) -> (i32, i32, i32) {
    %c0_i32 = arith.constant 0 : i32
    %c0_i32_0 = arith.constant 0 : i32
    %c0_i32_1 = arith.constant 0 : i32
    return %arg1, %c0_i32, %c0_i32_0 : i32, i32, i32
  }
  func.func @transform_8(%arg0: i32, %arg1: i32) -> (i32, i32, i32) {
    %c0_i32 = arith.constant 0 : i32
    %c0_i32_0 = arith.constant 0 : i32
    %c0_i32_1 = arith.constant 0 : i32
    return %arg1, %c0_i32, %c0_i32_0 : i32, i32, i32
  }
  func.func @transform_9(%arg0: i32, %arg1: i32) -> (i32, i32, i32) {
    %c0_i32 = arith.constant 0 : i32
    %c0_i32_0 = arith.constant 0 : i32
    %c0_i32_1 = arith.constant 0 : i32
    return %arg1, %c0_i32, %c0_i32_0 : i32, i32, i32
  }
  func.func @transform_10(%arg0: i32, %arg1: i32) -> (i32, i32, i32) {
    %c0_i32 = arith.constant 0 : i32
    %c0_i32_0 = arith.constant 0 : i32
    %c0_i32_1 = arith.constant 0 : i32
    return %arg1, %c0_i32, %c0_i32_0 : i32, i32, i32
  }
  func.func @transform_11(%arg0: i32, %arg1: i32) -> (i32, i32, i32) {
    %c0_i32 = arith.constant 0 : i32
    %c0_i32_0 = arith.constant 0 : i32
    %c0_i32_1 = arith.constant 0 : i32
    return %arg1, %c0_i32, %c0_i32_0 : i32, i32, i32
  }
  func.func @transform_12(%arg0: i32, %arg1: i32) -> (i32, i32, i32) {
    %c0_i32 = arith.constant 0 : i32
    %c0_i32_0 = arith.constant 0 : i32
    %c0_i32_1 = arith.constant 0 : i32
    return %arg1, %c0_i32, %c0_i32_0 : i32, i32, i32
  }
  func.func @transform_13(%arg0: i32, %arg1: i32) -> (i32, i32, i32) {
    %c0_i32 = arith.constant 0 : i32
    %c0_i32_0 = arith.constant 0 : i32
    %c0_i32_1 = arith.constant 0 : i32
    return %arg1, %c0_i32, %c0_i32_0 : i32, i32, i32
  }
  func.func @transform_14(%arg0: i32, %arg1: i32) -> (i32, i32, i32) {
    %c0_i32 = arith.constant 0 : i32
    %c0_i32_0 = arith.constant 0 : i32
    %c0_i32_1 = arith.constant 0 : i32
    return %arg1, %c0_i32, %c0_i32_0 : i32, i32, i32
  }
  func.func @transform_15(%arg0: i32, %arg1: i32) -> (i32, i32, i32) {
    %c0_i32 = arith.constant 0 : i32
    %c0_i32_0 = arith.constant 0 : i32
    %c0_i32_1 = arith.constant 0 : i32
    return %arg1, %c0_i32, %c0_i32_0 : i32, i32, i32
  }
  func.func @transform_16(%arg0: i32, %arg1: i32) -> (i32, i32, i32) {
    %c0_i32 = arith.constant 0 : i32
    %c0_i32_0 = arith.constant 0 : i32
    %c0_i32_1 = arith.constant 0 : i32
    return %arg1, %c0_i32, %c0_i32_0 : i32, i32, i32
  }
  func.func @transform_17(%arg0: i32, %arg1: i32) -> (i32, i32) {
    %c0_i32 = arith.constant 0 : i32
    %c0_i32_0 = arith.constant 0 : i32
    return %arg0, %c0_i32 : i32, i32
  }
}

</mosaic_0001>

<bundles_post_ra>
// kernel: tpu_custom_call.1
= control target key start
LH: loop header
LB: loop body
LE: loop exit
PB: predicated region body
PF: predicated region fallthrough
CT: control target
= control target key end

     0   :  { %s2857_s0 = inlined_call_operand.hbm [shape: f32[16,32], index: 0, kind: input, shape index: {}]   ;;  %s2858_s1 = inlined_call_operand.vmem [shape: f32[2,32,32], index: 1, kind: input, shape index: {}]   ;;  %s2859_s2 = inlined_call_operand.hbm [shape: f32[2,1,32], index: 2, kind: input, shape index: {}]   ;;  %s2860_s3 = inlined_call_operand.vmem [shape: f32[2,32,32], index: 3, kind: input, shape index: {}]   ;;  %s2861_s4 = inlined_call_operand.vmem [shape: f32[2,1,32], index: 4, kind: input, shape index: {}]   ;;  %s2862_s5 = inlined_call_operand.vmem [shape: f32[2,32,32], index: 5, kind: input, shape index: {}]   ;;  %s2863_s6 = inlined_call_operand.hbm [shape: f32[2,1,32], index: 6, kind: input, shape index: {}]   ;;  %s2864_s7 = inlined_call_operand.vmem [shape: f32[2,32,32], index: 7, kind: input, shape index: {}]   ;;  %s2865_s8 = inlined_call_operand.vmem [shape: f32[2,1,32], index: 8, kind: input, shape index: {}]   ;;  %s2866_s9 = inlined_call_operand.vmem [shape: f32[2,1,32], index: 9, kind: input, shape index: {}]   ;;  %s2867_s10 = inlined_call_operand.hbm [shape: f32[2,1,32], index: 10, kind: input, shape index: {}]   ;;  %s2868_s11 = inlined_call_operand.vmem [shape: f32[2,32,128], index: 11, kind: input, shape index: {}]   ;;  %s2869_s12 = inlined_call_operand.vmem [shape: f32[2,1,128], index: 12, kind: input, shape index: {}]   ;;  %s2870_s13 = inlined_call_operand.vmem [shape: f32[2,128,32], index: 13, kind: input, shape index: {}]   ;;  %s2871_s14 = inlined_call_operand.vmem [shape: f32[2,1,32], index: 14, kind: input, shape index: {}]   ;;  %s2872_s15 = inlined_call_operand.hbm [shape: f32[2,1,32], index: 15, kind: input, shape index: {}]   ;;  %s2873_s16 = inlined_call_operand.vmem [shape: f32[2,1,32], index: 16, kind: input, shape index: {}]   ;;  %s2874_s17 = inlined_call_operand.hbm [shape: f32[16,32], index: 17, kind: output, shape index: {}]  }
   0x1   :  { %2892 = sst [smem:[#allocation33_spill]] %s2857_s0 }
   0x2   :  { %2893 = sst [smem:[#allocation34_spill]] %s2858_s1 }
   0x3   :  { %2894 = sst [smem:[#allocation35_spill]] %s2859_s2 }
   0x4   :  { %2895 = sst [smem:[#allocation36_spill]] %s2860_s3 }
   0x5   :  { %2896 = sst [smem:[#allocation37_spill]] %s2861_s4 }
   0x6   :  { %2897 = sst [smem:[#allocation38_spill]] %s2862_s5 }
   0x7   :  { %2898 = sst [smem:[#allocation39_spill]] %s2863_s6 }
   0x8   :  { %2899 = sst [smem:[#allocation40_spill]] %s2864_s7 }
   0x9   :  { %2900 = sst [smem:[#allocation41_spill]] %s2865_s8 }
   0xa   :  { %2901 = sst [smem:[#allocation42_spill]] %s2866_s9 }
   0xb   :  { %2902 = sst [smem:[#allocation43_spill]] %s2867_s10 }
   0xc   :  { %2903 = sst [smem:[#allocation44_spill]] %s2868_s11 }
   0xd   :  { %2904 = sst [smem:[#allocation45_spill]] %s2869_s12 }
   0xe   :  { %2905 = sst [smem:[#allocation46_spill]] %s2870_s13 }
   0xf   :  { %2906 = sst [smem:[#allocation47_spill]] %s2871_s14 }
  0x10   :  { %2907 = sst [smem:[#allocation48_spill]] %s2872_s15 }
  0x11   :  { %2908 = sst [smem:[#allocation49_spill]] %s2873_s16 }
  0x12   :  { %2909 = sst [smem:[#allocation50_spill]] %s2874_s17 }
  0x13   :  { %22 = vsyncpa [#allocation4], 0 }
  0x14   :  { %24 = vsyncpa [#allocation4 + $0x1], 0 }
  0x15   :  { %25 = vsyncpa [#allocation7], 0 }
  0x16   :  { %27 = vsyncpa [#allocation7 + $0x1], 0 }
  0x17   :  { %28 = vsyncpa [#allocation10], 0 }
  0x18   :  { %30 = vsyncpa [#allocation10 + $0x1], 0 }
  0x19   :  { %31 = vsyncpa [#allocation5], 0 }
  0x1a   :  { %33 = vsyncpa [#allocation5 + $0x1], 0  ;;  %s2388_s24 = smov 0   ;;  %s2390_s25 = smov 0  }
  0x1b   :  { %s2392_s26 = smov 0   ;;  %s2394_s27 = smov 0  }
  0x1c   :  { %s2396_s28 = smov 0   ;;  %s2398_s29 = smov 0  }
  0x1d   :  { %s2400_s0 = smov 0   ;;  %s2402_s30 = smov 0  }
  0x1e   :  { %s2404_s18 = smov 0   ;;  %s2406_s19 = smov 0  }
  0x1f   :  { %s2408_s1 = smov 0  }
  0x20 LB: > { %2910 = sst [smem:[#allocation17_spill]] %s2253_s25  ;;  %s48_s20 = sadd.s32 1, %s2281_s18  ;;  %s2289_s1 = sphi %s2408_s1, %s39_s1   ;;  %s2285_s19 = sphi %s2406_s19, %s2981_s19   ;;  %s2281_s18 = sphi %s2404_s18, %s2980_s18   ;;  %s2277_s30 = sphi %s2402_s30, %s2979_s30   ;;  %s2273_s0 = sphi %s2400_s0, %s2978_s0   ;;  %s2269_s29 = sphi %s2398_s29, %s2977_s29   ;;  %s2265_s28 = sphi %s2396_s28, %s2976_s28   ;;  %s2261_s27 = sphi %s2394_s27, %s2975_s27   ;;  %s2257_s26 = sphi %s2392_s26, %s2974_s26   ;;  %s2253_s25 = sphi %s2390_s25, %s2973_s25   ;;  %s2249_s24 = sphi %s2388_s24, %s2972_s24  }
  0x21   : > { %2911 = sst [smem:[#allocation18_spill]] %s2257_s26  ;;  %p66_p0 = scmp.eq.s32.totalorder %s2289_s1, 0 }
  0x22   : > { %2912 = sst [smem:[#allocation19_spill]] %s2261_s27  ;;  %p2445_p1 = scmp.ge.s32.totalorder %s48_s20, 2 }
  0x23   : > { %2913 = sst [smem:[#allocation20_spill]] %s2265_s28  ;;  %s110_s22 = sadd.s32 1, %s2257_s26 }
  0x24   : > { %2914 = sst [smem:[#allocation21_spill]] %s2269_s29  ;;  %p117_p2 = scmp.ne.s32.totalorder %s2257_s26, %s2253_s25 }
  0x25   : > { %2915 = sst [smem:[#allocation22_spill]] %s2273_s0  ;;  %p123_p3 = scmp.ne.s32.totalorder %s2253_s25, %s2249_s24 }
  0x26   : > { %2916 = sst [smem:[#allocation23_spill]] %s2277_s30  ;;  %s2983_s20 = smov (%p2445_p1, %s48_s20), 0 }
  0x27   : > { %2917 = sst [smem:[#allocation24_spill]] %s2281_s18  ;;  %p2460_p4 = por %p117_p2, %p66_p0 }
  0x28   : > { %2918 = sst [smem:[#allocation25_spill]] %s2285_s19  ;;  %s107_s17 = ssub.s32 %s2281_s18, %s2983_s20 }
  0x29   : > { %2919 = sst [smem:[#allocation26_spill]] %s2289_s1  ;;  %p1878_p5 = scmp.lt.s32.totalorder %s2289_s1, 4 }
  0x2a   : > { %2921 = sst [smem:[#allocation27_spill]] %s2983_s20  ;;  %p108_p6 = scmp.eq.s32.totalorder %s107_s17, 0 }
  0x2b   : > { %s564_s30 = sand.u32 1, %s2289_s1   ;;  %s2469_s16 = sand.u32 1, %s2257_s26  }
  0x2c   : > { %s2472_s13 = scalar_select %p108_p6, %s2257_s26, %s110_s22  }
  0x2d   : > { %s2924_s2 = sld [smem:[#allocation35_spill]]  ;;  %s567_s8 = scalar_lea.vmem [#allocation6], %s2469_s16 }
  0x2e   : > { %2923 = sst [smem:[#allocation28_spill]] %s2472_s13  ;;  %s574_s7 = sshll.u32 %s567_s8, 4  ;;  %s575_s7 = int_to_ptr.vmem [resolvable:$true] %s574_s7 }
  0x2f   : > { %p2483_p7 = pnand %p1878_p5, %p2460_p4  ;;  %p1803_p8 = scmp.ge.s32.totalorder %s2289_s1, 1 }
  0x30   : > { %p706_p9 = scmp.lt.s32.totalorder %s2289_s1, 5  ;;  %s2927_s10 = sld [smem:[#allocation43_spill]] }
  0x31   : > { %s1798_s12 = sadd.s32 4294967294, %s2289_s1   ;;  %s51_s14 = sadd.s32 1, %s2285_s19 }
  0x32   : > { %p2494_p10 = pnand %p1803_p8, %p706_p9  ;;  %s2985_s14 = smov (!%p2445_p1, %s51_s14), %s2285_s19 }
  0x33   : > { %s570_s11 = scalar_lea.hbm %s2924_s2, %s2281_s18  ;;  %s643_s2 = scalar_lea.vmem [#allocation9], %s2469_s16 }
  0x34   : > { %s572_s9 = sshll.u32 %s570_s11, 4  ;;  %s2489_s11 = scalar_lea.sflag [#allocation7], %s564_s30  ;;  %s573_s9 = int_to_ptr.hbm [resolvable:$true] %s572_s9 }
  0x35   : > { %1864 = dma.hbm_to_vmem [thread:$0]  (!%p2483_p7), %s573_s9, 16, %s575_s7, %s2489_s11  }
  0x36   : > { %s646_s22 = scalar_lea.hbm %s2927_s10, %s2281_s18  ;;  %s650_s20 = sshll.u32 %s643_s2, 4  ;;  %s651_s20 = int_to_ptr.vmem [resolvable:$true] %s650_s20 }
  0x37   : > { %s648_s23 = sshll.u32 %s646_s22, 4  ;;  %s2503_s7 = scalar_lea.sflag [#allocation10], %s564_s30  ;;  %s649_s23 = int_to_ptr.hbm [resolvable:$true] %s648_s23 }
  0x38   : > { %1870 = dma.hbm_to_vmem [thread:$0]  (!%p2483_p7), %s649_s23, 16, %s651_s20, %s2503_s7  }
  0x39   : > { %s2509_s9 = sadd.s32 4294967295, %s2289_s1   ;;  %s58_s2 = sadd.s32 1, %s2269_s29 }
  0x3a   : > { %p65_p11 = scmp.ne.s32.totalorder %s2269_s29, %s2265_s28  ;;  %p71_p12 = scmp.ne.s32.totalorder %s2265_s28, %s2261_s27 }
  0x3b   : > { %p53_p13 = scmp.ge.s32.totalorder %s2985_s14, 2  ;;  %p72_p2 = scmp.eq.s32.totalorder %s2509_s9, 0 }
  0x3c   : > { %p2524_p4 = por %p66_p0, %p65_p11  ;;  %p511_p6 = scmp.eq.s32.totalorder %s2509_s9, 3 }
  0x3d   : > { %s2987_s14 = smov (%p53_p13, %s2985_s14), 0  ;;  %p2534_p8 = por %p72_p2, %p71_p12 }
  0x3e   : > { %2929 = sst [smem:[#allocation29_spill]] %s2987_s14  ;;  %p2541_p1 = por %p123_p3, %p72_p2 }
  0x3f   : > { %s55_s22 = ssub.s32 %s2285_s19, %s2987_s14  ;;  %p2547_p0 = por %p511_p6, %p65_p11 }
  0x40   : > { %p56_p9 = scmp.eq.s32.totalorder %s55_s22, 0  ;;  %p517_p13 = scmp.eq.s32.totalorder %s1798_s12, 3 }
  0x41   : > { %s2932_s23 = scalar_select %p2547_p0, 1, 0 }
  0x42   : > { %s537_s10 = sand.u32 1, %s2269_s29   ;;  %s1802_s13 = sshll.u32 %s2285_s19, 3 }
  0x43   : > { %2933 = sst [smem:[#allocation30_spill]] %s2932_s23  ;;  %p2559_p3 = por %p517_p13, %p71_p12 }
  0x44   : > { %s2554_s26 = scalar_select %p56_p9, %s2269_s29, %s58_s2  }
  0x45   : > { %s2935_s24 = scalar_select %p2559_p3, 1, 0 }
  0x46   : > { %2934 = sst [smem:[#allocation31_spill]] %s2554_s26  ;;  %s1801_s5 = sshll.u32 %s537_s10, 3 }
  0x47   : > { %2936 = sst [smem:[#allocation32_spill]] %s2935_s24  ;;  %s541_s12 = scalar_lea.vmem [#allocation3], %s1801_s5 }
  0x48   : > { %s2937_s4 = sld [smem:[#allocation33_spill]]  ;;  %s549_s19 = sshll.u32 %s541_s12, 4  ;;  %s550_s19 = int_to_ptr.vmem [resolvable:$true] %s549_s19 }
  0x49   : > { %p1859_p11 = pnand %p1878_p5, %p2524_p4  ;;  %s2938_s6 = sld [smem:[#allocation39_spill]] }
  0x4a   : > { %s538_s14 = scalar_lea.sflag [#allocation4], %s537_s10  ;;  %s2939_s15 = sld [smem:[#allocation48_spill]] }
  0x4b   : > { %s688_s12 = scalar_lea.vmem [#allocation11], %s2469_s16  ;;  %s2589_s10 = sand.u32 (!%p2494_p10), 1, %s2265_s28  }
  0x4c   : > { %s695_s24 = sshll.u32 %s688_s12, 4  ;;  %s2884_s26 = sshll.u32 (!%p2494_p10), %s2589_s10, 3  ;;  %s696_s24 = int_to_ptr.vmem [resolvable:$true] %s695_s24 }
  0x4e   : > { %s545_s0 = scalar_lea.hbm %s2937_s4, %s1802_s13  ;;  %s606_s4 = scalar_lea.vmem [#allocation8], %s2469_s16 }
  0x4f   : > { %s547_s22 = sshll.u32 %s545_s0, 4  ;;  %s609_s29 = scalar_lea.hbm %s2938_s6, %s2281_s18  ;;  %s548_s22 = int_to_ptr.hbm [resolvable:$true] %s547_s22 }
  0x50   : > { %s611_s3 = sshll.u32 %s609_s29, 4  ;;  %s613_s13 = sshll.u32 %s606_s4, 4  ;;  %s612_s3 = int_to_ptr.hbm [resolvable:$true] %s611_s3  ;;  %s614_s13 = int_to_ptr.vmem [resolvable:$true] %s613_s13 }
  0x51   : > { %1861 = dma.hbm_to_vmem [thread:$0]  (!%p1859_p11), %s548_s22, 128, %s550_s19, %s538_s14  }
  0x52   : > { %1867 = dma.hbm_to_vmem [thread:$0]  (!%p2483_p7), %s612_s3, 16, %s614_s13, %s2489_s11  }
  0x53   : > { %s691_s30 = scalar_lea.hbm %s2939_s15, %s2281_s18  ;;  %710 = sbr.rel (%p2494_p10) target bundleno = 1797 (0x705), region = 88 }
  0x54   : > { %s693_s27 = sshll.u32 %s691_s30, 4  ;;  %s713_s29 = scalar_lea.sflag (!%p2494_p10), [#allocation4], %s2589_s10  ;;  %s694_s27 = int_to_ptr.hbm [resolvable:$true] %s693_s27 }
  0x55   : > { %1873 = dma.hbm_to_vmem [thread:$0]  (!%p2483_p7), %s694_s27, 16, %s696_s24, %s2503_s7  }
  0x56   : > { %s2595_s16 = scalar_lea.vmem (!%p2494_p10), [#allocation3], %s2884_s26 }
  0x58   : > { %2232 = dma.done.wait (%p2534_p8), %s713_s29, 128  }
  0x59   : > { %2234 = vsyncadd (%p2534_p8), %s713_s29, 4294967168  ;;  %s722_s27 = sand.u32 1, %s2509_s9   ;;  %s2603_s19 = sand.u32 1, %s2253_s25  }
  0x5a   : > { %s723_s17 = scalar_lea.sflag [#allocation7], %s722_s27 }
  0x5b   : > { %2236 = dma.done.wait (%p2541_p1), %s723_s17, 32  }
  0x5c   : > { %2238 = vsyncadd (%p2541_p1), %s723_s17, 4294967264  ;;  %s741_s7 = scalar_lea.sflag [#allocation10], %s722_s27 }
  0x5d   : > { %2240 = dma.done.wait (%p2541_p1), %s741_s7, 32  }
  0x5e   : > { %2242 = vsyncadd (%p2541_p1), %s741_s7, 4294967264  ;;  %s2940_s9 = sld [smem:[#allocation22_spill]] }
  0x5f   : > { %s2942_s5 = sld [smem:[#allocation34_spill]] }
  0x60   : > { %s2943_s29 = sld [smem:[#allocation36_spill]] }
  0x61   : > { %s2944_s20 = sld [smem:[#allocation38_spill]] }
  0x62   : > { %s2945_s6 = sld [smem:[#allocation40_spill]] }
  0x63   : > { %s2947_s14 = sld [smem:[#allocation42_spill]] }
  0x64   : > { %p868_p5 = scmp.lt.s32.totalorder %s2940_s9, 1  ;;  %s2948_s18 = sld [smem:[#allocation44_spill]] }
  0x65   : > { %s2949_s7 = sld [smem:[#allocation45_spill]]  ;;  %p1818_p7 = scmp.ne.s32.totalorder %s2940_s9, 0 }
  0x66   : > { %s2618_s24 = scalar_select %p868_p5, %s2940_s9, 1 }
  0x67   : > { %s2950_s1 = sld [smem:[#allocation47_spill]] }
  0x68   : > { %s1840_s22 = sshll.u32 %s2618_s24, 5  ;;  %s1845_s26 = sshll.u32 %s2618_s24, 7 }
  0x69   : > { %s872_s0 = scalar_lea.vmem %s2942_s5, %s1840_s22  ;;  %s2631_s27 = scalar_lea.vmem %s2943_s29, %s1840_s22 }
  0x6a   : > { %s2636_s8 = scalar_lea.vmem %s2944_s20, %s1840_s22  ;;  %s2641_s15 = scalar_lea.vmem %s2945_s6, %s1840_s22 }
  0x6b   : > { %s896_s30 = scalar_lea.vmem %s2947_s14, %s2618_s24  ;;  %s2654_s28 = scalar_lea.vmem %s2948_s18, %s1840_s22 }
  0x6c   : > { %s904_s25 = scalar_lea.vmem %s2949_s7, %s2618_s24  ;;  %s2951_s21 = sld [smem:[#allocation46_spill]] }
  0x6d   : > { %s912_s23 = scalar_lea.vmem %s2950_s1, %s2618_s24  ;;  %s2952_s5 = sld [smem:[#allocation49_spill]] }
  0x6e   : > { %s752_s18 = scalar_lea.vmem [#allocation11], %s2603_s19  ;;  %s2953_s22 = sshll.u32 %s2589_s10, 3 }
  0x6f   : > { %s2677_s29 = scalar_lea.vmem [#allocation12], %s2953_s22  ;;  %919 = sbr.rel (%p1818_p7) target bundleno = 118 (0x76), region = 112 }
  0x72   : > { %s2668_s4 = scalar_lea.vmem %s2951_s21, %s1845_s26 }
  0x73   : > { %s915_s12 = scalar_lea.vmem %s2952_s5, %s2618_s24 }
  0x74   : > { %v920_v0 = vld [vmem:[%s2595_s16] sm:$0xff]  ;;  %vm921_vm0 = vcmask 261120  }
  0x75   : > { %922 = vst.msk [vmem:[%s2677_s29] sm:$0xff] %vm921_vm0, %v920_v0 }
  0x76 PF: > { %v927_v1 = vld [vmem:[%s872_s0 + $0x18] sm:$0xff]  ;;  %v926_v2 = vld [vmem:[%s872_s0 + $0x10] sm:$0xff]  ;;  %v925_v3 = vld [vmem:[%s872_s0 + $0x8] sm:$0xff]  ;;  %vm932_vm1 = vcmask 261120   ;;  %s2954_s9 = sld [smem:[#allocation37_spill]]  ;;  %s2956_s20 = scalar_lea.vmem [#allocation6], %s2603_s19 }
  0x77   : > { %948 = vmatpush.msra.mxu1 %v927_v1  ;;  %v924_v4 = vld [vmem:[%s872_s0] sm:$0xff]  ;;  %v959_v6 = vld [vmem:[%s2631_s27 + $0x18] sm:$0xff]  ;;  %v958_v7 = vld [vmem:[%s2631_s27 + $0x10] sm:$0xff]  ;;  %vm1012_vm2 = vcmask 64512   ;;  %s2292_s17 = smov 112   ;;  %s2293_s7 = smov 120  }
  0x78   : > { %v957_v8 = vld [vmem:[%s2631_s27 + $0x8] sm:$0xff]  ;;  %v956_v9 = vld [vmem:[%s2631_s27] sm:$0xff]  ;;  %s2291_s27 = smov 104   ;;  %v987_v16 = vld [vmem:[%s2636_s8 + $0x18] sm:$0xff]  ;;  %s2294_s26 = smov 16   ;;  %vm1144_vm3 = vcmask 130112  }
  0x79   : > { %949 = vmatpush.msra.mxu1 %v926_v2  ;;  %v1975_v13 = vld [vmem:[%s2956_s20] ss:$0 sm:$0xff]  ;;  %v986_v17 = vld [vmem:[%s2636_s8 + $0x10] sm:$0xff]  ;;  %1004 = vmatpush.msra.mxu2 %v987_v16  ;;  %v985_v18 = vld [vmem:[%s2636_s8 + $0x8] sm:$0xff]  ;;  %s2295_s6 = smov 8   ;;  %s2296_s11 = smov 24  }
  0x7a   : > { %v984_v19 = vld [vmem:[%s2636_s8] sm:$0xff]  ;;  %s2957_s8 = scalar_lea.vmem [#allocation8], %s2603_s19  ;;  %vm1215_vm4 = vcmask 195712   ;;  %vm1286_vm5 = vcmask 261312   ;;  %s2958_s3 = sld [smem:[#allocation41_spill]] }
  0x7b   : > { %950 = vmatpush.msra.mxu1 %v925_v3  ;;  %1005 = vmatpush.msra.mxu2 %v986_v17  ;;  %v1977_v28 = vld [vmem:[%s2957_s8] ss:$0 sm:$0xff]  ;;  %s2961_s5 = scalar_lea.vmem [#allocation9], %s2603_s19  ;;  %s1517_s2 = sshll.u32 %s2677_s29, 4  ;;  %s1518_s2 = int_to_ptr.vmem [resolvable:$true] %s1517_s2 }
  0x7c   : > { %v2683_v5 = vld [vmem:[%s2677_s29] sm:$0xff]  ;;  %s2955_s0 = scalar_lea.vmem %s2954_s9, %s2618_s24  ;;  %s2964_s9 = sld [smem:[#allocation23_spill]] }
  0x7d   : > { %951 = vmatpush.msra.mxu1 %v924_v4  ;;  %v1976_v11 = vld [vmem:[%s2955_s0] ss:$0 sm:$0xff]  ;;  %1006 = vmatpush.msra.mxu2 %v985_v18  ;;  %s1505_s19 = scalar_lea.sflag [#allocation5], %s2589_s10 }
  0x7e   : > { %1819 = vmatmul.msk.f32.vlgmr.msra.gmra.mxu1 %vm932_vm1, %v2683_v5  ;;  %v1289_v16 = vld [vmem:[%s2641_s15] sm:$0xff] }
  0x7f   : > { %976 = vmatpush.msrb.mxu1 %v959_v6  ;;  %1007 = vmatpush.msra.mxu2 %v984_v19 }
  0x80   : > { %1821 = vmatmul.msk.f32.vlgmr.msra.gmra.mxu2 %vm932_vm1, %v2683_v5  ;;  %s2959_s21 = scalar_lea.vmem %s2958_s3, %s2618_s24 }
  0x81   : > { %977 = vmatpush.msrb.mxu1 %v958_v7 }
  0x83   : > { %978 = vmatpush.msrb.mxu1 %v957_v8 }
  0x85   : > { %979 = vmatpush.msrb.mxu1 %v956_v9 }
  0x86   : > { %1820 = vmatmul.msk.f32.vlgmr.msrb.gmra.mxu1 %vm932_vm1, %v2683_v5 }
  0xfb   : > { %v953_v10 = vpop.f32.mrf.mxu1 }
  0xfc   : > { %v954_v15 = vadd.f32 %v1975_v13, %v953_v10  ;;  %v1292_v13 = vld [vmem:[%s2641_s15 + $0x18] sm:$0xff] }
 0x103   : > { %v981_v12 = vpop.f32.mrf.mxu1  ;;  %v1009_v29 = vpop.f32.mrf.mxu2 }
 0x104   : > { %v982_v14 = vadd.f32 %v1976_v11, %v981_v12  ;;  %v1010_v30 = vadd.f32 %v1977_v28, %v1009_v29  ;;  %v1359_v28 = vld [vmem:[%s2654_s28 + $0x18] sm:$0xff]  ;;  %v1358_v29 = vld [vmem:[%s2654_s28 + $0x10] sm:$0xff] }
 0x106   : > { %1219 = vrot.lane.b32.xlu2 %v982_v14, %s2291_s27  ;;  %1148 = vrot.lane.b32.xlu1 %v982_v14, %s2292_s17 }
 0x107   : > { %1076 = vrot.lane.b32.xlu0 %v982_v14, %s2293_s7  ;;  %1822 = vmatpush.xpose.msk.msra.mxu3 %vm1012_vm2, %v982_v14  ;;  %v1291_v14 = vld [vmem:[%s2641_s15 + $0x10] sm:$0xff] }
 0x10a   : > { %1823 = vmatmul.msk.f32.vlgmr.msra.gmra.mxu3 %vm1012_vm2, %v954_v15 }
 0x10b   : > { %1068 = vmatpush.msrb.mxu3 %v1010_v30 }
 0x10e   : > { %1217 = vrot.lane.b32.xlu2 %v954_v15, %s2291_s27  ;;  %1146 = vrot.lane.b32.xlu1 %v954_v15, %s2292_s17 }
 0x10f   : > { %1074 = vrot.lane.b32.xlu0 %v954_v15, %s2293_s7  ;;  %v1290_v15 = vld [vmem:[%s2641_s15 + $0x8] sm:$0xff] }
 0x160   : > { %v1220_v20 = vpop.permute.xlu2 %1219 }
 0x161   : > { %1831 = vmatpush.xpose.msk.msra.mxu0 %vm1012_vm2, %v1220_v20 }
 0x168   : > { %v1218_v21 = vpop.permute.xlu2 %1217 }
 0x169   : > { %1832 = vmatmul.msk.f32.vlgmr.msra.gmra.mxu0 %vm1012_vm2, %v1218_v21  ;;  %v1978_v21 = vld [vmem:[%s2959_s21] ss:$0 sm:$0xff] }
 0x178   : > { %v1149_v22 = vpop.permute.xlu1 %1148 }
 0x179   : > { %v1077_v23 = vpop.permute.xlu0 %1076 }
 0x17a   : > { %1825 = vmatpush.xpose.msk.msrb.mxu2 %vm1012_vm2, %v1077_v23 }
 0x17e   : > { %1828 = vmatpush.xpose.msk.msra.mxu2 %vm1012_vm2, %v1149_v22 }
 0x180   : > { %v1147_v25 = vpop.permute.xlu1 %1146 }
 0x181   : > { %v1075_v24 = vpop.permute.xlu0 %1074 }
 0x182   : > { %1826 = vmatmul.msk.f32.vlgmr.msrb.gmra.mxu2 %vm1012_vm2, %v1075_v24 }
 0x183   : > { %1312 = vmatpush.msrb.mxu2 %v1292_v13  ;;  %v1427_v13 = vld [vmem:[%s2668_s4] sm:$0xff] }
 0x185   : > { %1313 = vmatpush.msrb.mxu2 %v1291_v14 }
 0x187   : > { %1314 = vmatpush.msrb.mxu2 %v1290_v15 }
 0x189   : > { %1315 = vmatpush.msrb.mxu2 %v1289_v16 }
 0x18a   : > { %1829 = vmatmul.msk.f32.vlgmr.msra.gmra.mxu2 %vm1012_vm2, %v1147_v25 }
 0x18d   : > { %v1036_v26 = vpop.f32.mrf.mxu3 }
 0x18e   : > { %v1039_v27 = vsel %vm1012_vm2, %v1036_v26, -inf }
 0x18f   : > { %1040 = vmax.xlane.f32.xlu0 %v1039_v27 }
 0x1e6   : > { %v1242_v40 = vpop.f32.mrf.mxu0 }
 0x1e7   : > { %v1245_v41 = vsel %vm1012_vm2, %v1242_v40, -inf }
 0x202   : > { %v1041_v31 = vpop.xlane.xlu0 %1040 }
 0x203   : > { %v1042_v32 = vsub.f32 %v1036_v26, %v1041_v31  ;;  %v1356_v31 = vld [vmem:[%s2654_s28] sm:$0xff] }
 0x205   : > { %v1043_v33 = vmul.f32 1.442695, %v1042_v32  ;;  %v1099_v34 = vpop.f32.mrf.mxu2 }
 0x206   : > { %v1102_v35 = vsel %vm1012_vm2, %v1099_v34, -inf }
 0x207   : > { %1985 = vpow2.f32 %v1043_v33  ;;  %1103 = vmax.xlane.f32.xlu1 %v1102_v35 }
 0x20d   : > { %v1986_v36 = vpop.eup %1985  ;;  %v1171_v37 = vpop.f32.mrf.mxu2 }
 0x20e   : > { %v1174_v38 = vsel %vm1012_vm2, %v1171_v37, -inf  ;;  %v1045_v39 = vsel %vm1012_vm2, %v1986_v36, 0.0 }
 0x20f   : > { %1175 = vmax.xlane.f32.xlu2 %v1174_v38  ;;  %1046 = vadd.xlane.f32.xlu0 %v1045_v39 }
 0x217   : > { %1246 = vmax.xlane.f32.xlu2 %v1245_v41 }
 0x27a   : > { %v1104_v42 = vpop.xlane.xlu1 %1103 }
 0x27b   : > { %v1105_v43 = vsub.f32 %v1099_v34, %v1104_v42 }
 0x27d   : > { %v1106_v44 = vmul.f32 1.442695, %v1105_v43 }
 0x27f   : > { %1987 = vpow2.f32 %v1106_v44 }
 0x282   : > { %v1176_v45 = vpop.xlane.xlu2 %1175  ;;  %v1047_v46 = vpop.xlane.xlu0 %1046 }
 0x283   : > { %v1177_v47 = vsub.f32 %v1171_v37, %v1176_v45  ;;  %1989 = vrcp.f32 %v1047_v46  ;;  %v1979_v46 = vld [vmem:[%s896_s30] ss:$0 sm:$0xff] }
 0x285   : > { %v1988_v48 = vpop.eup %1987  ;;  %v1178_v49 = vmul.f32 1.442695, %v1177_v47 }
 0x286   : > { %v1108_v50 = vsel %vm1012_vm2, %v1988_v48, 0.0 }
 0x287   : > { %1991 = vpow2.f32 %v1178_v49  ;;  %1109 = vadd.xlane.f32.xlu1 %v1108_v50  ;;  %v1980_v49 = vld [vmem:[%s2961_s5] ss:$0 sm:$0xff] }
 0x289   : > { %v1990_v51 = vpop.eup %1989 }
 0x28a   : > { %v1247_v52 = vpop.xlane.xlu2 %1246  ;;  %v1049_v53 = vmul.f32 %v1990_v51, %v1986_v36 }
 0x28b   : > { %v1248_v54 = vsub.f32 %v1242_v40, %v1247_v52  ;;  %v1442_v52 = vld [vmem:[%s2668_s4 + $0x78] sm:$0xff] }
 0x28c   : > { %1824 = vmatmul.msk.f32.vlgmr.msrb.gmra.mxu3 %vm1012_vm2, %v1049_v53  ;;  %v1441_v53 = vld [vmem:[%s2668_s4 + $0x70] sm:$0xff]  ;;  %1447 = vmatpush.msrb.mxu0 %v1442_v52 }
 0x28d   : > { %v1992_v55 = vpop.eup %1991  ;;  %v1249_v56 = vmul.f32 1.442695, %v1248_v54  ;;  %v1440_v54 = vld [vmem:[%s2668_s4 + $0x68] sm:$0xff] }
 0x28e   : > { %v1180_v57 = vsel %vm1012_vm2, %v1992_v55, 0.0  ;;  %1448 = vmatpush.msrb.mxu0 %v1441_v53 }
 0x28f   : > { %1993 = vpow2.f32 %v1249_v56  ;;  %1181 = vadd.xlane.f32.xlu2 %v1180_v57  ;;  %v1438_v56 = vld [vmem:[%s2668_s4 + $0x58] sm:$0xff]  ;;  %v1981_v57 = vld [vmem:[%s904_s25] ss:$0 sm:$0xff] }
 0x290   : > { %1449 = vmatpush.msrb.mxu0 %v1440_v54 }
 0x295   : > { %v1994_v58 = vpop.eup %1993 }
 0x296   : > { %v1251_v59 = vsel %vm1012_vm2, %v1994_v58, 0.0 }
 0x297   : > { %1252 = vadd.xlane.f32.xlu0 %v1251_v59 }
 0x2a0   : > { %1114 = vrot.lane.b32.xlu1 %v1010_v30, %s2293_s7 }
 0x2a7   : > { %1185 = vrot.lane.b32.xlu2 %v1010_v30, %s2292_s17 }
 0x2ab   : > { %1256 = vrot.lane.b32.xlu0 %v1010_v30, %s2291_s27  ;;  %v1357_v30 = vld [vmem:[%s2654_s28 + $0x8] sm:$0xff]  ;;  %s2965_s27 = sld [smem:[#allocation50_spill]] }
 0x2b1   : > { %s2966_s17 = smov %s2965_s27 }
 0x2b2   : > { %s2179_s24 = scalar_lea.hbm %s2966_s17, 16 }
 0x2fa   : > { %v1110_v61 = vpop.xlane.xlu1 %1109 }
 0x302   : > { %v1182_v60 = vpop.xlane.xlu2 %1181 }
 0x303   : > { %1995 = vrcp.f32 %v1182_v60  ;;  %v1436_v60 = vld [vmem:[%s2668_s4 + $0x48] sm:$0xff] }
 0x304   : > { %1997 = vrcp.f32 %v1110_v61 }
 0x309   : > { %v1996_v62 = vpop.eup %1995 }
 0x30a   : > { %v1184_v63 = vmul.f32 %v1996_v62, %v1992_v55  ;;  %v1186_v0 = vpop.permute.xlu2 %1185  ;;  %v1998_v1 = vpop.eup %1997  ;;  %v1439_v55 = vld [vmem:[%s2668_s4 + $0x60] sm:$0xff] }
 0x30b   : > { %1206 = vmatpush.msra.mxu3 %v1186_v0  ;;  %v1253_v3 = vpop.xlane.xlu0 %1252  ;;  %v1112_v4 = vmul.f32 %v1998_v1, %v1988_v48  ;;  %1450 = vmatpush.msrb.mxu0 %v1439_v55  ;;  %v1435_v62 = vld [vmem:[%s2668_s4 + $0x40] sm:$0xff]  ;;  %v1434_v0 = vld [vmem:[%s2668_s4 + $0x38] sm:$0xff] }
 0x30c   : > { %1830 = vmatmul.msk.f32.vlgmr.msra.gmra.mxu3 %vm1012_vm2, %v1184_v63  ;;  %1999 = vrcp.f32 %v1253_v3 }
 0x30d   : > { %1379 = vmatpush.msrb.mxu3 %v1359_v28  ;;  %1451 = vmatpush.msrb.mxu0 %v1438_v56 }
 0x30f   : > { %v1070_v2 = vpop.f32.mrf.mxu3  ;;  %1380 = vmatpush.msrb.mxu3 %v1358_v29 }
 0x310   : > { %1073 = vst.msk [vmem:[#allocation2] sm:$0xff] %vm1012_vm2, %v1070_v2  ;;  %v1433_v2 = vld [vmem:[%s2668_s4 + $0x30] sm:$0xff] }
 0x311   : > { %1381 = vmatpush.msrb.mxu3 %v1357_v30 }
 0x312   : > { %v1115_v6 = vpop.permute.xlu1 %1114  ;;  %v2000_v7 = vpop.eup %1999 }
 0x313   : > { %1135 = vmatpush.msra.mxu1 %v1115_v6  ;;  %v1255_v8 = vmul.f32 %v2000_v7, %v1994_v58  ;;  %1382 = vmatpush.msrb.mxu3 %v1356_v31  ;;  %v1437_v58 = vld [vmem:[%s2668_s4 + $0x50] sm:$0xff]  ;;  %v1431_v7 = vld [vmem:[%s2668_s4 + $0x20] sm:$0xff] }
 0x314   : > { %1827 = vmatmul.msk.f32.vlgmr.msra.gmra.mxu1 %vm1012_vm2, %v1112_v4  ;;  %1452 = vmatpush.msrb.mxu0 %v1437_v58  ;;  %v1432_v4 = vld [vmem:[%s2668_s4 + $0x28] sm:$0xff] }
 0x316   : > { %1453 = vmatpush.msrb.mxu0 %v1436_v60 }
 0x318   : > { %1454 = vmatpush.msrb.mxu0 %v1435_v62 }
 0x31a   : > { %1455 = vmatpush.msrb.mxu0 %v1434_v0  ;;  %v1983_v0 = vld [vmem:[%s752_s18] ss:$0 sm:$0xff] }
 0x31c   : > { %1456 = vmatpush.msrb.mxu0 %v1433_v2 }
 0x31d   : > { %v1257_v9 = vpop.permute.xlu0 %1256 }
 0x31e   : > { %1277 = vmatpush.msrb.mxu1 %v1257_v9  ;;  %1457 = vmatpush.msrb.mxu0 %v1432_v4  ;;  %v1429_v9 = vld [vmem:[%s2668_s4 + $0x10] sm:$0xff] }
 0x31f   : > { %1833 = vmatmul.msk.f32.vlgmr.msrb.gmra.mxu1 %vm1012_vm2, %v1255_v8  ;;  %v1430_v8 = vld [vmem:[%s2668_s4 + $0x18] sm:$0xff] }
 0x320   : > { %1458 = vmatpush.msrb.mxu0 %v1431_v7 }
 0x322   : > { %1459 = vmatpush.msrb.mxu0 %v1430_v8 }
 0x324   : > { %1460 = vmatpush.msrb.mxu0 %v1429_v9 }
 0x38f   : > { %v1208_v10 = vpop.f32.mrf.mxu3 }
 0x390   : > { %1212 = vrot.lane.b32.xlu0 %v1208_v10, %s2294_s26  ;;  %v1428_v10 = vld [vmem:[%s2668_s4 + $0x8] sm:$0xff] }
 0x391   : > { %v1137_v11 = vpop.f32.mrf.mxu1  ;;  %1461 = vmatpush.msrb.mxu0 %v1428_v10 }
 0x392   : > { %1141 = vrot.lane.b32.xlu1 %v1137_v11, %s2295_s6 }
 0x393   : > { %1462 = vmatpush.msrb.mxu0 %v1427_v13 }
 0x39c   : > { %v1279_v12 = vpop.f32.mrf.mxu1 }
 0x39d   : > { %1283 = vrot.lane.b32.xlu2 %v1279_v12, %s2296_s11 }
 0x3f7   : > { %v1284_v19 = vpop.permute.xlu2 %1283 }
 0x402   : > { %v1213_v18 = vpop.permute.xlu0 %1212 }
 0x404   : > { %v1142_v17 = vpop.permute.xlu1 %1141 }
 0x405   : > { %1145 = vst.msk [vmem:[#allocation2] sm:$0xff] %vm1144_vm3, %v1142_v17 }
 0x406   : > { %1216 = vst.msk [vmem:[#allocation2] sm:$0xff] %vm1215_vm4, %v1213_v18 }
 0x407   : > { %1287 = vst.msk [vmem:[#allocation2] sm:$0xff] %vm1286_vm5, %v1284_v19 }
 0x40e   : > { %v1288_v20 = vld [vmem:[#allocation2] sm:$0xff] }
 0x40f   : > { %1834 = vmatmul.msk.f32.vlgmr.msrb.gmra.mxu2 %vm932_vm1, %v1288_v20 }
 0x492   : > { %v1317_v22 = vpop.f32.mrf.mxu2 }
 0x493   : > { %v1318_v23 = vadd.f32 %v1978_v21, %v1317_v22 }
 0x495   : > { %v1320_v24 = vadd.f32 %v1318_v23, %v2683_v5 }
 0x497   : > { %v1323_v25 = vsel %vm932_vm1, %v1320_v24, 0.0  ;;  %v1327_v26 = vmul.f32 %v1320_v24, %v1320_v24 }
 0x498   : > { %1324 = vadd.xlane.f32.xlu1 %v1323_v25 }
 0x499   : > { %v1328_v27 = vsel %vm932_vm1, %v1327_v26, 0.0 }
 0x49a   : > { %1329 = vadd.xlane.f32.xlu0 %v1328_v27 }
 0x50b   : > { %v1325_v32 = vpop.xlane.xlu1 %1324 }
 0x50c   : > { %v1326_v33 = vmul.f32 0.03125, %v1325_v32 }
 0x50d   : > { %v1330_v34 = vpop.xlane.xlu0 %1329 }
 0x50e   : > { %v1332_v5 = vmul.f32 %v1326_v33, %v1326_v33  ;;  %v1331_v35 = vmul.f32 0.03125, %v1330_v34  ;;  %v1335_v45 = vsub.f32 %v1320_v24, %v1326_v33 }
 0x510   : > { %v1333_v36 = vsub.f32 %v1331_v35, %v1332_v5 }
 0x512   : > { %v1334_v37 = vmax.f32 %v1333_v36, 0.0  ;;  %v2297_v36 = vmov -1.0  }
 0x514   : > { %v1336_v38 = vadd.f32 1e-12, %v1334_v37 }
 0x516   : > { %2001 = vrsqrt.f32 %v1336_v38  ;;  %vm1343_vm7 = vweird.f32 %v1336_v38 }
 0x51c   : > { %v2002_v39 = vpop.eup %2001 }
 0x51d   : > { %v1338_v40 = vmul.f32 %v2002_v39, %v1336_v38  ;;  %vm1344_vm6 = vweird.f32 %v2002_v39 }
 0x51e   : > { %vm1345_vm8 = vmor %vm1343_vm7, %vm1344_vm6 }
 0x51f   : > { %v1339_v41 = vmul.f32 %v2002_v39, %v1338_v40 }
 0x521   : > { %v1340_v42 = vmul.f32 0.5, %v1339_v41 }
 0x523   : > { %v1341_v43 = vsub.f32 1.5, %v1340_v42  ;;  %v1982_v42 = vld [vmem:[%s912_s23] ss:$0 sm:$0xff]  ;;  %s1837_s23 = sshll.u32 %s2964_s9, 3 }
 0x524   : > { %s1515_s7 = scalar_lea.hbm %s2965_s27, %s1837_s23 }
 0x525   : > { %v1342_v44 = vmul.f32 %v2002_v39, %v1341_v43  ;;  %s1519_s15 = sshll.u32 %s1515_s7, 4  ;;  %s1520_s15 = int_to_ptr.hbm [resolvable:$true] %s1519_s15 }
 0x526   : > { %s2173_s18 = sshra.s32 %s1520_s15, 4  ;;  %s2174_s18 = int_to_ptr.hbm [resolvable:$true] %s2173_s18 }
 0x527   : > { %v1346_v47 = vsel %vm1345_vm8, %v2002_v39, %v1342_v44  ;;  %s2175_s3 = scalar_lea.hbm %s2174_s18, 8  ;;  %p2180_p4 = scmp.lt.s32.totalorder %s2174_s18, %s2966_s17 }
 0x528   : > { %v1347_v48 = vmul.f32 %v1346_v47, %v1335_v45  ;;  %p2176_p10 = scmp.ne.s32.totalorder %s2174_s18, %s2175_s3  ;;  %p2181_p6 = scmp.lt.s32.totalorder %s2179_s24, %s2175_s3 }
 0x52a   : > { %v1351_v50 = vmul.f32 %v1979_v46, %v1347_v48  ;;  %p2177_p12 = pnand %p2176_p10, %p2547_p0  ;;  %p2182_p8 = por %p2181_p6, %p2180_p4 }
 0x52c   : > { %v2762_v51 = vadd.f32 %v1980_v49, %v1351_v50  ;;  %p2178_p2 = pneg %p2177_p12 }
 0x52e   : > { %1835 = vmatmul.msk.f32.vlgmr.msrb.gmra.mxu3 %vm932_vm1, %v2762_v51  ;;  %p2183_p1 = pnand %p2182_p8, %p2178_p2 }
 0x5b1   : > { %v1384_v59 = vpop.f32.mrf.mxu3 }
 0x5b2   : > { %v1385_v61 = vadd.f32 %v1981_v57, %v1384_v59 }
 0x5b4   : > { %v1388_v63 = vmul.f32 0.70710677, %v1385_v61  ;;  %v1387_v39 = vmul.f32 0.5, %v1385_v61 }
 0x5b6   : > { %v1391_v1 = vand.u32 2147483647, %v1388_v63  ;;  %vm1389_vm13 = vcmp.ge.f32.partialorder %v1388_v63, 0.0 }
 0x5b7   : > { %v1390_v37 = vsel %vm1389_vm13, 1.0, %v2297_v36 }
 0x5b8   : > { %v1392_v3 = vmul.f32 0.3275911, %v1391_v1  ;;  %v1418_v21 = vsub.f32 0.0, %v1391_v1 }
 0x5ba   : > { %v1393_v6 = vadd.f32 1.0, %v1392_v3  ;;  %v1419_v25 = vmul.f32 %v1418_v21, %v1391_v1  ;;  %v1984_v3 = vld [vmem:[%s915_s12] ss:$0 sm:$0xff] }
 0x5bc   : > { %2003 = vrcp.f32 %v1393_v6  ;;  %v1405_v15 = vand.u32 2147483648, %v1393_v6  ;;  %v1403_v17 = vand.u32 2147483647, %v1393_v6  ;;  %vm1399_vm10 = vweird.f32 %v1393_v6 }
 0x5bd   : > { %v1420_v28 = vmul.f32 1.442695, %v1419_v25 }
 0x5be   : > { %v1406_v19 = vor.u32 1.1754944e-38, %v1405_v15  ;;  %vm1404_vm12 = vcmp.eq.f32.partialorder %v1403_v17, 8.507059e+37 }
 0x5bf   : > { %2005 = vpow2.f32 %v1420_v28 }
 0x5c2   : > { %v2004_v11 = vpop.eup %2003 }
 0x5c3   : > { %v1395_v12 = vmul.f32 %v2004_v11, %v1393_v6  ;;  %vm1400_vm9 = vweird.f32 %v2004_v11 }
 0x5c4   : > { %vm1401_vm11 = vmor %vm1399_vm10, %vm1400_vm9 }
 0x5c5   : > { %v1396_v14 = vsub.f32 1.0, %v1395_v12  ;;  %v2006_v34 = vpop.eup %2005 }
 0x5c7   : > { %v1397_v16 = vmul.f32 %v2004_v11, %v1396_v14 }
 0x5c9   : > { %v1398_v18 = vadd.f32 %v2004_v11, %v1397_v16 }
 0x5cb   : > { %v1402_v20 = vsel %vm1401_vm11, %v2004_v11, %v1398_v18 }
 0x5cc   : > { %v1407_v22 = vsel %vm1404_vm12, %v1406_v19, %v1402_v20 }
 0x5cd   : > { %v1409_v23 = vmul.f32 1.0614054, %v1407_v22 }
 0x5cf   : > { %v1410_v24 = vadd.f32 -1.4531521, %v1409_v23 }
 0x5d1   : > { %v1411_v26 = vmul.f32 %v1410_v24, %v1407_v22 }
 0x5d3   : > { %v1412_v27 = vadd.f32 1.4214138, %v1411_v26 }
 0x5d5   : > { %v1413_v29 = vmul.f32 %v1412_v27, %v1407_v22 }
 0x5d7   : > { %v1414_v30 = vadd.f32 -0.28449672, %v1413_v29 }
 0x5d9   : > { %v1415_v31 = vmul.f32 %v1414_v30, %v1407_v22 }
 0x5db   : > { %v1416_v32 = vadd.f32 0.2548296, %v1415_v31 }
 0x5dd   : > { %v1417_v33 = vmul.f32 %v1416_v32, %v1407_v22 }
 0x5df   : > { %v1422_v5 = vmul.f32 %v2006_v34, %v1417_v33 }
 0x5e1   : > { %v1423_v35 = vsub.f32 1.0, %v1422_v5 }
 0x5e3   : > { %v1424_v38 = vmul.f32 %v1423_v35, %v1390_v37 }
 0x5e5   : > { %v1425_v40 = vadd.f32 1.0, %v1424_v38 }
 0x5e7   : > { %v1426_v41 = vmul.f32 %v1425_v40, %v1387_v39 }
 0x5e9   : > { %1463 = vmatmul.f32.vlgmr.msrb.gmra.mxu0 %v1426_v41 }
 0x666   : > { %v1464_v43 = vpop.f32.mrf.mxu0 }
 0x667   : > { %v1465_v44 = vadd.f32 %v1982_v42, %v1464_v43 }
 0x669   : > { %v1467_v45 = vadd.f32 %v1465_v44, %v2762_v51 }
 0x66b   : > { %v1470_v46 = vsel %vm932_vm1, %v1467_v45, 0.0  ;;  %v1474_v47 = vmul.f32 %v1467_v45, %v1467_v45 }
 0x66c   : > { %1471 = vadd.xlane.f32.xlu2 %v1470_v46 }
 0x66d   : > { %v1475_v48 = vsel %vm932_vm1, %v1474_v47, 0.0 }
 0x66e   : > { %1476 = vadd.xlane.f32.xlu1 %v1475_v48 }
 0x6df   : > { %v1472_v49 = vpop.xlane.xlu2 %1471 }
 0x6e0   : > { %v1473_v50 = vmul.f32 0.03125, %v1472_v49 }
 0x6e1   : > { %v1477_v52 = vpop.xlane.xlu1 %1476 }
 0x6e2   : > { %v1479_v53 = vmul.f32 %v1473_v50, %v1473_v50  ;;  %v1478_v54 = vmul.f32 0.03125, %v1477_v52  ;;  %v1482_v63 = vsub.f32 %v1467_v45, %v1473_v50 }
 0x6e4   : > { %v1480_v55 = vsub.f32 %v1478_v54, %v1479_v53 }
 0x6e6   : > { %v1481_v56 = vmax.f32 %v1480_v55, 0.0 }
 0x6e8   : > { %v1483_v57 = vadd.f32 1e-12, %v1481_v56 }
 0x6ea   : > { %2007 = vrsqrt.f32 %v1483_v57  ;;  %vm1490_vm15 = vweird.f32 %v1483_v57 }
 0x6f0   : > { %v2008_v51 = vpop.eup %2007 }
 0x6f1   : > { %v1485_v58 = vmul.f32 %v2008_v51, %v1483_v57  ;;  %vm1491_vm14 = vweird.f32 %v2008_v51 }
 0x6f2   : > { %vm1492_vm0 = vmor %vm1490_vm15, %vm1491_vm14 }
 0x6f3   : > { %v1486_v59 = vmul.f32 %v2008_v51, %v1485_v58 }
 0x6f5   : > { %v1487_v60 = vmul.f32 0.5, %v1486_v59 }
 0x6f7   : > { %v1488_v61 = vsub.f32 1.5, %v1487_v60 }
 0x6f9   : > { %v1489_v62 = vmul.f32 %v2008_v51, %v1488_v61 }
 0x6fb   : > { %v1493_v1 = vsel %vm1492_vm0, %v2008_v51, %v1489_v62 }
 0x6fc   : > { %v1494_v2 = vmul.f32 %v1493_v1, %v1482_v63 }
 0x6fe   : > { %v1498_v4 = vmul.f32 %v1983_v0, %v1494_v2 }
 0x700   : > { %v1502_v6 = vadd.f32 %v1984_v3, %v1498_v4 }
 0x702   : > { %1503 = vst.msk [vmem:[%s2677_s29] sm:$0xff] %vm932_vm1, %v1502_v6 }
 0x703   : > { %2186 = shalt.err (!%p2183_p1)
}
 0x704   : > { %1856 = dma.vmem_to_hbm [thread:$0]  (%p2547_p0), %s1518_s2, 128, %s1520_s15, %s1505_s19  }
 0x705 PF: > { %s2969_s10 = sld [smem:[#allocation26_spill]] }
 0x706   : > { %s2970_s29 = sld [smem:[#allocation19_spill]] }
 0x70b   : > { %p1879_p9 = scmp.ge.s32.totalorder %s2969_s10, 2 }
 0x70c   : > { %s1531_s5 = sand.u32 1, %s2970_s29  }
 0x70d   : > { %p1875_p13 = pnand %p1879_p9, %p2559_p3  ;;  %s1532_s30 = scalar_lea.sflag [#allocation5], %s1531_s5 }
 0x70f   : > { %p1876_p11 = pneg %p1875_p13 }
 0x711   : > { %2244 = dma.done.wait (%p1876_p11), %s1532_s30, 128  }
 0x712   : > { %2246 = vsyncadd (%p1876_p11), %s1532_s30, 4294967168  ;;  %s39_s1 = sadd.s32 1, %s2969_s10   ;;  %s2972_s24 = sld [smem:[#allocation17_spill]] }
 0x713   : > { %p36_p5 = scmp.ge.s32.totalorder %s39_s1, 6   ;;  %s2973_s25 = sld [smem:[#allocation18_spill]] }
 0x714   : > { %s2974_s26 = sld [smem:[#allocation28_spill]] }
 0x715   : > { %s2975_s27 = sld [smem:[#allocation20_spill]] }
 0x716   : > { %s2976_s28 = sld [smem:[#allocation21_spill]] }
 0x717   : > { %s2977_s29 = sld [smem:[#allocation31_spill]]  ;;  %38 = sbr.rel (!%p36_p5) target bundleno = 32 (0x20), region = 221 }
 0x718   : > { %s2978_s0 = sld [smem:[#allocation24_spill]] }
 0x719   : > { %s2979_s30 = sld [smem:[#allocation25_spill]] }
 0x71a   : > { %s2980_s18 = sld [smem:[#allocation27_spill]] }
 0x71b   : > { %s2981_s19 = sld [smem:[#allocation29_spill]] }
 0x71c   :  { %1538 = vsyncpa [#allocation4], 1 }
 0x71d   :  { %1540 = vsyncpa [#allocation4 + $0x1], 1 }
 0x71e   :  { %1541 = vsyncpa [#allocation7], 1 }
 0x71f   :  { %1543 = vsyncpa [#allocation7 + $0x1], 1 }
 0x720   :  { %1544 = vsyncpa [#allocation10], 1 }
 0x721   :  { %1546 = vsyncpa [#allocation10 + $0x1], 1 }
 0x722   :  { %1547 = vsyncpa [#allocation5], 1 }
 0x723   :  { %1549 = vsyncpa [#allocation5 + $0x1], 1 }

</bundles_post_ra>
